<compile_context>
chip_gen: v7x
topology: tpu7x:2x2x1
jax: 0.10.0
libtpu: 0.0.40
codegen_flags: <defaults>
</compile_context>

<pallas_src>
import math
import jax
import jax.numpy as jnp
from jax.experimental import pallas as pl
from jax.experimental.pallas import tpu as pltpu


# ---------------------------------------------------------------------------
# in-kernel helpers (f32 math)
# ---------------------------------------------------------------------------
def _layernorm(x, g, b, eps=1e-5):
    # matches torch.nn.LayerNorm(model_dim), eps=1e-5
    mu = jnp.mean(x, axis=-1, keepdims=True)
    var = jnp.mean((x - mu) ** 2, axis=-1, keepdims=True)
    return (x - mu) * jax.lax.rsqrt(var + eps) * g + b


def _activation(x, name):
    if name == 'gelu':
        # exact (erf-based) gelu, same as the torch reference
        return x * 0.5 * (1.0 + jax.lax.erf(x / math.sqrt(2.0)))
    if name == 'relu':
        return jnp.maximum(x, 0.0)
    if name == 'swish':
        return x * jax.nn.sigmoid(x)
    raise ValueError(f'unknown activation {name}')


# ---------------------------------------------------------------------------
# fused EncoderBlock kernel (one batch element per grid step)
# ---------------------------------------------------------------------------
def make_encoder_block_kernel(num_heads, head_dim, pre_norm, act_name, emit_attn):
    D = num_heads * head_dim
    scale = 1.0 / math.sqrt(head_dim)

    def kernel(x_ref,
               wqkv_ref, bqkv_ref, wo_ref, bo_ref, g1_ref, be1_ref,
               w1_ref, bf1_ref, w2_ref, bf2_ref, g2_ref, be2_ref,
               out_ref, *rest):
        if emit_attn:
            attn_ref, ctx_ref = rest
        else:
            attn_ref = None
            (ctx_ref,) = rest

        x = x_ref[0]                                   # (S, D) f32
        resid = x
        xa = _layernorm(x, g1_ref[...], be1_ref[...]) if pre_norm else x

        # ---------------- Bert-style multi-head self-attention ----------------
        # one dense fused QKV projection: (S, D) @ (D, 3D), bf16 operands, f32 acc
        qkv = jnp.dot(xa.astype(jnp.bfloat16), wqkv_ref[...],
                      preferred_element_type=jnp.float32) + bqkv_ref[...]
        q = qkv[:, 0 * D:1 * D]
        k = qkv[:, 1 * D:2 * D]
        v = qkv[:, 2 * D:3 * D]

        # per-head attention: static lane slices; no accumulator carried across heads.
        for h in range(num_heads):
            sl = slice(h * head_dim, (h + 1) * head_dim)
            qh = q[:, sl].astype(jnp.bfloat16)
            kh = k[:, sl].astype(jnp.bfloat16)
            vh = v[:, sl].astype(jnp.bfloat16)

            s = jnp.dot(qh, kh.T, preferred_element_type=jnp.float32) * scale   # (S, S)
            s = s - jnp.max(s, axis=-1, keepdims=True)
            e = jnp.exp(s)
            p = e * pl.reciprocal(jnp.sum(e, axis=-1, keepdims=True), approx=True)
            if emit_attn:
                attn_ref[0, h] = p                      # post-softmax probabilities

            ctx_h = jnp.dot(p.astype(jnp.bfloat16), vh,
                            preferred_element_type=jnp.float32)                 # (S, hd)
            # assemble per-head context into a lane-dense (S, D) VMEM buffer
            ctx_ref[:, sl] = ctx_h

        # single dense output projection: (S, D) @ (D, D)
        attn_out = jnp.dot(ctx_ref[...].astype(jnp.bfloat16), wo_ref[...],
                           preferred_element_type=jnp.float32) + bo_ref[...]

        x1 = resid + attn_out
        if not pre_norm:
            x1 = _layernorm(x1, g1_ref[...], be1_ref[...])

        # ------------------------------ Feedforward ---------------------------
        resid2 = x1
        xf = _layernorm(x1, g2_ref[...], be2_ref[...]) if pre_norm else x1
        h1 = _activation(
            jnp.dot(xf.astype(jnp.bfloat16), w1_ref[...],
                    preferred_element_type=jnp.float32) + bf1_ref[...],
            act_name)
        h2 = jnp.dot(h1.astype(jnp.bfloat16), w2_ref[...],
                     preferred_element_type=jnp.float32) + bf2_ref[...]
        out = h2 + resid2
        if not pre_norm:
            out = _layernorm(out, g2_ref[...], be2_ref[...])

        out_ref[0] = out.astype(out_ref.dtype)

    return kernel


def _block_cost_estimate(B, S, D, F, H, emit_attn):
    hd = D // H
    flops_per_batch = (
        2 * S * D * 3 * D          # fused QKV projection
        + H * 2 * S * S * hd       # scores
        + H * 2 * S * S * hd       # probs @ V
        + 2 * S * D * D            # output projection
        + 2 * S * D * F            # fc1
        + 2 * S * F * D            # fc2
    )
    transcendentals = B * (H * S * S + S * F)            # softmax exp + activation
    weight_bytes = 2 * (3 * D * D + D * D + 2 * D * F)    # bf16 matmul weights
    param_bytes = 4 * (3 * D + D + F + D + 4 * D)         # f32 biases + LN params
    act_bytes = 4 * B * S * D * 2                          # x in + out
    attn_bytes = 4 * B * H * S * S if emit_attn else 0
    return pl.CostEstimate(
        flops=B * flops_per_batch,
        transcendentals=transcendentals,
        bytes_accessed=weight_bytes + param_bytes + act_bytes + attn_bytes,
    )


def encoder_block(x, params, *, num_heads, head_dim, pre_norm, act_name, return_attn):
    B, S, D = x.shape
    F = params['w1'].shape[1]
    H = num_heads

    kernel = make_encoder_block_kernel(H, head_dim, pre_norm, act_name, return_attn)

    def const_spec(shape):
        # whole-array block with constant index map (weights / biases / LN params)
        return pl.BlockSpec(shape, lambda b, _n=len(shape): (0,) * _n)

    in_specs = [
        pl.BlockSpec((1, S, D), lambda b: (b, 0, 0)),      # x
        const_spec((D, 3 * D)), const_spec((1, 3 * D)),    # fused Wqkv, bqkv
        const_spec((D, D)), const_spec((1, D)),            # Wo, bo
        const_spec((1, D)), const_spec((1, D)),            # attn LayerNorm gamma/beta
        const_spec((D, F)), const_spec((1, F)),            # fc1
        const_spec((F, D)), const_spec((1, D)),            # fc2
        const_spec((1, D)), const_spec((1, D)),            # ffn LayerNorm gamma/beta
    ]
    out_specs = [pl.BlockSpec((1, S, D), lambda b: (b, 0, 0))]
    out_shape = [jax.ShapeDtypeStruct((B, S, D), jnp.float32)]
    if return_attn:
        out_specs.append(pl.BlockSpec((1, H, S, S), lambda b: (b, 0, 0, 0)))
        out_shape.append(jax.ShapeDtypeStruct((B, H, S, S), jnp.float32))

    outs = pl.pallas_call(
        kernel,
        grid=(B,),
        in_specs=in_specs,
        out_specs=out_specs,
        out_shape=out_shape,
        scratch_shapes=[pltpu.VMEM((S, D), jnp.float32)],   # per-head context assembly
        compiler_params=pltpu.CompilerParams(
            dimension_semantics=("parallel",),
            vmem_limit_bytes=64 * 1024 * 1024,
        ),
        cost_estimate=_block_cost_estimate(B, S, D, F, H, return_attn),
    )(x,
      params['wqkv'], params['bqkv'], params['wo'], params['bo'],
      params['g1'], params['be1'],
      params['w1'], params['bf1'], params['w2'], params['bf2'],
      params['g2'], params['be2'])

    if return_attn:
        return outs[0], outs[1]
    return outs[0], None


# ---------------------------------------------------------------------------
# Encoder forward (non-hierarchical: one parameter set per block)
# ---------------------------------------------------------------------------
def encoder_forward(x, blocks_params, config, return_attn=False):
    attn_scores = {}
    H = config['num_heads']
    hd = config['model_dim'] // H
    for i, p in enumerate(blocks_params):
        x, att = encoder_block(
            x, p,
            num_heads=H, head_dim=hd,
            pre_norm=config['pre_norm'],
            act_name=config['ff_activation'],
            return_attn=return_attn)
        if return_attn:
            attn_scores[f'layer_{i}'] = att
    if return_attn:
        return x, attn_scores
    return x


# ---------------------------------------------------------------------------
# deterministic synthetic parameter initialization (torch nn.Linear-style)
# ---------------------------------------------------------------------------
def init_block_params(key, D, F, H, matmul_dtype=jnp.bfloat16):
    ks = jax.random.split(key, 6)

    def lin(k, din, dout):
        bound = 1.0 / math.sqrt(din)
        kw, kb = jax.random.split(k)
        w = jax.random.uniform(kw, (din, dout), jnp.float32, -bound, bound)
        b = jax.random.uniform(kb, (dout,), jnp.float32, -bound, bound)
        return w, b

    wq, bq = lin(ks[0], D, D)
    wk, bk = lin(ks[1], D, D)
    wv, bv = lin(ks[2], D, D)
    wo, bo = lin(ks[3], D, D)
    w1, b1 = lin(ks[4], D, F)
    w2, b2 = lin(ks[5], F, D)

    return {
        # fused QKV weight stored dense (D, 3D); matmul weights pre-cast to bf16
        'wqkv': jnp.concatenate([wq, wk, wv], axis=1).astype(matmul_dtype),
        'bqkv': jnp.concatenate([bq, bk, bv]).reshape(1, 3 * D).astype(jnp.float32),
        'wo': wo.astype(matmul_dtype), 'bo': bo.reshape(1, D).astype(jnp.float32),
        'g1': jnp.ones((1, D), jnp.float32), 'be1': jnp.zeros((1, D), jnp.float32),
        'w1': w1.astype(matmul_dtype), 'bf1': b1.reshape(1, F).astype(jnp.float32),
        'w2': w2.astype(matmul_dtype), 'bf2': b2.reshape(1, D).astype(jnp.float32),
        'g2': jnp.ones((1, D), jnp.float32), 'be2': jnp.zeros((1, D), jnp.float32),
    }


if __name__ == "__main__":
    config = {
        'model_dim': 128,                  # lane-aligned model dim
        'ff_dim': 256,
        'num_heads': 4,                    # head_dim = 32
        'ff_activation': 'swish',          # valid ACT_FN entry; gelu/relu also implemented
        'pre_norm': False,                 # classic post-norm BERT block
        'num_encoder_blocks': 2,
        'hierarchical_weight_sharing': False,
    }
    B, S, D = 2, 16, config['model_dim']

    key = jax.random.PRNGKey(0)
    kx, kp = jax.random.split(key)
    x = jax.random.normal(kx, (B, S, D), jnp.float32)

    block_keys = jax.random.split(kp, config['num_encoder_blocks'])
    blocks_params = [init_block_params(k, D, config['ff_dim'], config['num_heads'])
                     for k in block_keys]

    # fast path: no attention-probability writeback
    out_fast = encoder_forward(x, blocks_params, config, return_attn=False)
    out_fast = jax.block_until_ready(out_fast)

    # path returning per-layer attention probabilities
    out, attn = encoder_forward(x, blocks_params, config, return_attn=True)
    out = jax.block_until_ready(out)
    for v in attn.values():
        jax.block_until_ready(v)

    assert out.shape == (B, S, D)
    assert out_fast.shape == (B, S, D)
    assert attn['layer_0'].shape == (B, config['num_heads'], S, S)
    assert bool(jnp.all(jnp.isfinite(out)))
    assert bool(jnp.all(jnp.isfinite(attn['layer_1'])))
    print("KERNEL_OK")
</pallas_src>

<mosaic_0001>
module attributes {stable_mosaic.version = 11 : i64} {
  func.func @kernel(%arg0: i32, %arg1: memref<1x16x128xf32, #tpu.memory_space<vmem>>, %arg2: memref<128x384xbf16, #tpu.memory_space<vmem>>, %arg3: memref<1x384xf32, #tpu.memory_space<vmem>>, %arg4: memref<128x128xbf16, #tpu.memory_space<vmem>>, %arg5: memref<1x128xf32, #tpu.memory_space<vmem>>, %arg6: memref<1x128xf32, #tpu.memory_space<vmem>>, %arg7: memref<1x128xf32, #tpu.memory_space<vmem>>, %arg8: memref<128x256xbf16, #tpu.memory_space<vmem>>, %arg9: memref<1x256xf32, #tpu.memory_space<vmem>>, %arg10: memref<256x128xbf16, #tpu.memory_space<vmem>>, %arg11: memref<1x128xf32, #tpu.memory_space<vmem>>, %arg12: memref<1x128xf32, #tpu.memory_space<vmem>>, %arg13: memref<1x128xf32, #tpu.memory_space<vmem>>, %arg14: memref<1x16x128xf32, #tpu.memory_space<vmem>>, %arg15: memref<16x128xf32, #tpu.memory_space<vmem>>) attributes {dimension_semantics = [#tpu.dimension_semantics<parallel>], iteration_bounds = array<i64: 2>, scalar_prefetch = 0 : i64, scratch_operands = 1 : i64, tpu.core_type = #tpu.core_type<tc>, window_params = [{transform_indices = @transform_0, window_bounds = array<i64: 1, 16, 128>}, {pipeline_mode = #tpu.pipeline_mode<synchronous>, transform_indices = @transform_1, window_bounds = array<i64: 128, 384>}, {pipeline_mode = #tpu.pipeline_mode<synchronous>, transform_indices = @transform_2, window_bounds = array<i64: 1, 384>}, {pipeline_mode = #tpu.pipeline_mode<synchronous>, transform_indices = @transform_3, window_bounds = array<i64: 128, 128>}, {pipeline_mode = #tpu.pipeline_mode<synchronous>, transform_indices = @transform_4, window_bounds = array<i64: 1, 128>}, {pipeline_mode = #tpu.pipeline_mode<synchronous>, transform_indices = @transform_5, window_bounds = array<i64: 1, 128>}, {pipeline_mode = #tpu.pipeline_mode<synchronous>, transform_indices = @transform_6, window_bounds = array<i64: 1, 128>}, {pipeline_mode = #tpu.pipeline_mode<synchronous>, transform_indices = @transform_7, window_bounds = array<i64: 128, 256>}, {pipeline_mode = #tpu.pipeline_mode<synchronous>, transform_indices = @transform_8, window_bounds = array<i64: 1, 256>}, {pipeline_mode = #tpu.pipeline_mode<synchronous>, transform_indices = @transform_9, window_bounds = array<i64: 256, 128>}, {pipeline_mode = #tpu.pipeline_mode<synchronous>, transform_indices = @transform_10, window_bounds = array<i64: 1, 128>}, {pipeline_mode = #tpu.pipeline_mode<synchronous>, transform_indices = @transform_11, window_bounds = array<i64: 1, 128>}, {pipeline_mode = #tpu.pipeline_mode<synchronous>, transform_indices = @transform_12, window_bounds = array<i64: 1, 128>}, {transform_indices = @transform_13, window_bounds = array<i64: 1, 16, 128>}]} {
    %c0 = arith.constant 0 : index
    %c0_0 = arith.constant 0 : index
    %c0_1 = arith.constant 0 : index
    %0 = vector.load %arg1[%c0, %c0_0, %c0_1] : memref<1x16x128xf32, #tpu.memory_space<vmem>>, vector<1x16x128xf32>
    %1 = vector.shape_cast %0 : vector<1x16x128xf32> to vector<16x128xf32>
    %2 = arith.truncf %1 : vector<16x128xf32> to vector<16x128xbf16>
    %c0_2 = arith.constant 0 : index
    %c0_3 = arith.constant 0 : index
    %3 = vector.load %arg2[%c0_2, %c0_3] : memref<128x384xbf16, #tpu.memory_space<vmem>>, vector<128x384xbf16>
    %cst = arith.constant dense<0.000000e+00> : vector<16x384xf32>
    %4 = tpu.matmul %2, %3, %cst {dimension_numbers = #tpu.dot_dimension_numbers<[1], [0], [0], [1], [0, 0, 1, 1], [], []>} : vector<16x128xbf16>, vector<128x384xbf16>, vector<16x384xf32> -> vector<16x384xf32>
    %c0_4 = arith.constant 0 : index
    %c0_5 = arith.constant 0 : index
    %5 = vector.load %arg3[%c0_4, %c0_5] : memref<1x384xf32, #tpu.memory_space<vmem>>, vector<1x384xf32>
    %6 = vector.broadcast %5 : vector<1x384xf32> to vector<16x384xf32>
    %7 = arith.addf %4, %6 : vector<16x384xf32>
    %8 = vector.extract_strided_slice %7 {offsets = [0, 0], sizes = [16, 128], strides = [1, 1]} : vector<16x384xf32> to vector<16x128xf32>
    %9 = vector.extract_strided_slice %7 {offsets = [0, 128], sizes = [16, 128], strides = [1, 1]} : vector<16x384xf32> to vector<16x128xf32>
    %10 = vector.extract_strided_slice %7 {offsets = [0, 256], sizes = [16, 128], strides = [1, 1]} : vector<16x384xf32> to vector<16x128xf32>
    %11 = vector.extract_strided_slice %8 {offsets = [0, 0], sizes = [16, 32], strides = [1, 1]} : vector<16x128xf32> to vector<16x32xf32>
    %12 = arith.truncf %11 : vector<16x32xf32> to vector<16x32xbf16>
    %13 = vector.extract_strided_slice %9 {offsets = [0, 0], sizes = [16, 32], strides = [1, 1]} : vector<16x128xf32> to vector<16x32xf32>
    %14 = arith.truncf %13 : vector<16x32xf32> to vector<16x32xbf16>
    %15 = vector.extract_strided_slice %10 {offsets = [0, 0], sizes = [16, 32], strides = [1, 1]} : vector<16x128xf32> to vector<16x32xf32>
    %16 = arith.truncf %15 : vector<16x32xf32> to vector<16x32xbf16>
    %17 = tpu.transpose %14, [1, 0] : vector<16x32xbf16> -> vector<32x16xbf16>
    %cst_6 = arith.constant dense<0.000000e+00> : vector<16x16xf32>
    %18 = tpu.matmul %12, %17, %cst_6 {dimension_numbers = #tpu.dot_dimension_numbers<[1], [0], [0], [1], [0, 0, 1, 1], [], []>} : vector<16x32xbf16>, vector<32x16xbf16>, vector<16x16xf32> -> vector<16x16xf32>
    %cst_7 = arith.constant 0.176776692 : f32
    %19 = vector.broadcast %cst_7 : f32 to vector<16x16xf32>
    %20 = arith.mulf %18, %19 : vector<16x16xf32>
    %cst_8 = arith.constant dense<0xFF800000> : vector<16xf32>
    %21 = vector.multi_reduction <maximumf>, %20, %cst_8 [1] : vector<16x16xf32> to vector<16xf32>
    %22 = vector.shape_cast %21 : vector<16xf32> to vector<16x1xf32>
    %23 = vector.broadcast %22 : vector<16x1xf32> to vector<16x16xf32>
    %24 = arith.subf %20, %23 : vector<16x16xf32>
    %25 = math.exp %24 : vector<16x16xf32>
    %cst_9 = arith.constant dense<0.000000e+00> : vector<16xf32>
    %26 = vector.multi_reduction <add>, %25, %cst_9 [1] : vector<16x16xf32> to vector<16xf32>
    %27 = vector.shape_cast %26 : vector<16xf32> to vector<16x1xf32>
    %28 = tpu.reciprocal %27 {approx = true} : vector<16x1xf32> -> vector<16x1xf32>
    %29 = vector.broadcast %28 : vector<16x1xf32> to vector<16x16xf32>
    %30 = arith.mulf %25, %29 : vector<16x16xf32>
    %31 = arith.truncf %30 : vector<16x16xf32> to vector<16x16xbf16>
    %cst_10 = arith.constant dense<0.000000e+00> : vector<16x32xf32>
    %32 = tpu.matmul %31, %16, %cst_10 {dimension_numbers = #tpu.dot_dimension_numbers<[1], [0], [0], [1], [0, 0, 1, 1], [], []>} : vector<16x16xbf16>, vector<16x32xbf16>, vector<16x32xf32> -> vector<16x32xf32>
    %c0_11 = arith.constant 0 : index
    %c0_12 = arith.constant 0 : index
    %33 = vector.load %arg15[%c0_11, %c0_12] : memref<16x128xf32, #tpu.memory_space<vmem>>, vector<16x32xf32>
    tpu.vector_store %arg15[%c0_11, %c0_12], %32 {strides = array<i32>} : memref<16x128xf32, #tpu.memory_space<vmem>>, vector<16x32xf32>,
    %34 = vector.extract_strided_slice %8 {offsets = [0, 32], sizes = [16, 32], strides = [1, 1]} : vector<16x128xf32> to vector<16x32xf32>
    %35 = arith.truncf %34 : vector<16x32xf32> to vector<16x32xbf16>
    %36 = vector.extract_strided_slice %9 {offsets = [0, 32], sizes = [16, 32], strides = [1, 1]} : vector<16x128xf32> to vector<16x32xf32>
    %37 = arith.truncf %36 : vector<16x32xf32> to vector<16x32xbf16>
    %38 = vector.extract_strided_slice %10 {offsets = [0, 32], sizes = [16, 32], strides = [1, 1]} : vector<16x128xf32> to vector<16x32xf32>
    %39 = arith.truncf %38 : vector<16x32xf32> to vector<16x32xbf16>
    %40 = tpu.transpose %37, [1, 0] : vector<16x32xbf16> -> vector<32x16xbf16>
    %cst_13 = arith.constant dense<0.000000e+00> : vector<16x16xf32>
    %41 = tpu.matmul %35, %40, %cst_13 {dimension_numbers = #tpu.dot_dimension_numbers<[1], [0], [0], [1], [0, 0, 1, 1], [], []>} : vector<16x32xbf16>, vector<32x16xbf16>, vector<16x16xf32> -> vector<16x16xf32>
    %cst_14 = arith.constant 0.176776692 : f32
    %42 = vector.broadcast %cst_14 : f32 to vector<16x16xf32>
    %43 = arith.mulf %41, %42 : vector<16x16xf32>
    %cst_15 = arith.constant dense<0xFF800000> : vector<16xf32>
    %44 = vector.multi_reduction <maximumf>, %43, %cst_15 [1] : vector<16x16xf32> to vector<16xf32>
    %45 = vector.shape_cast %44 : vector<16xf32> to vector<16x1xf32>
    %46 = vector.broadcast %45 : vector<16x1xf32> to vector<16x16xf32>
    %47 = arith.subf %43, %46 : vector<16x16xf32>
    %48 = math.exp %47 : vector<16x16xf32>
    %cst_16 = arith.constant dense<0.000000e+00> : vector<16xf32>
    %49 = vector.multi_reduction <add>, %48, %cst_16 [1] : vector<16x16xf32> to vector<16xf32>
    %50 = vector.shape_cast %49 : vector<16xf32> to vector<16x1xf32>
    %51 = tpu.reciprocal %50 {approx = true} : vector<16x1xf32> -> vector<16x1xf32>
    %52 = vector.broadcast %51 : vector<16x1xf32> to vector<16x16xf32>
    %53 = arith.mulf %48, %52 : vector<16x16xf32>
    %54 = arith.truncf %53 : vector<16x16xf32> to vector<16x16xbf16>
    %cst_17 = arith.constant dense<0.000000e+00> : vector<16x32xf32>
    %55 = tpu.matmul %54, %39, %cst_17 {dimension_numbers = #tpu.dot_dimension_numbers<[1], [0], [0], [1], [0, 0, 1, 1], [], []>} : vector<16x16xbf16>, vector<16x32xbf16>, vector<16x32xf32> -> vector<16x32xf32>
    %c0_18 = arith.constant 0 : index
    %c32 = arith.constant 32 : index
    %56 = vector.load %arg15[%c0_18, %c32] : memref<16x128xf32, #tpu.memory_space<vmem>>, vector<16x32xf32>
    tpu.vector_store %arg15[%c0_18, %c32], %55 {strides = array<i32>} : memref<16x128xf32, #tpu.memory_space<vmem>>, vector<16x32xf32>,
    %57 = vector.extract_strided_slice %8 {offsets = [0, 64], sizes = [16, 32], strides = [1, 1]} : vector<16x128xf32> to vector<16x32xf32>
    %58 = arith.truncf %57 : vector<16x32xf32> to vector<16x32xbf16>
    %59 = vector.extract_strided_slice %9 {offsets = [0, 64], sizes = [16, 32], strides = [1, 1]} : vector<16x128xf32> to vector<16x32xf32>
    %60 = arith.truncf %59 : vector<16x32xf32> to vector<16x32xbf16>
    %61 = vector.extract_strided_slice %10 {offsets = [0, 64], sizes = [16, 32], strides = [1, 1]} : vector<16x128xf32> to vector<16x32xf32>
    %62 = arith.truncf %61 : vector<16x32xf32> to vector<16x32xbf16>
    %63 = tpu.transpose %60, [1, 0] : vector<16x32xbf16> -> vector<32x16xbf16>
    %cst_19 = arith.constant dense<0.000000e+00> : vector<16x16xf32>
    %64 = tpu.matmul %58, %63, %cst_19 {dimension_numbers = #tpu.dot_dimension_numbers<[1], [0], [0], [1], [0, 0, 1, 1], [], []>} : vector<16x32xbf16>, vector<32x16xbf16>, vector<16x16xf32> -> vector<16x16xf32>
    %cst_20 = arith.constant 0.176776692 : f32
    %65 = vector.broadcast %cst_20 : f32 to vector<16x16xf32>
    %66 = arith.mulf %64, %65 : vector<16x16xf32>
    %cst_21 = arith.constant dense<0xFF800000> : vector<16xf32>
    %67 = vector.multi_reduction <maximumf>, %66, %cst_21 [1] : vector<16x16xf32> to vector<16xf32>
    %68 = vector.shape_cast %67 : vector<16xf32> to vector<16x1xf32>
    %69 = vector.broadcast %68 : vector<16x1xf32> to vector<16x16xf32>
    %70 = arith.subf %66, %69 : vector<16x16xf32>
    %71 = math.exp %70 : vector<16x16xf32>
    %cst_22 = arith.constant dense<0.000000e+00> : vector<16xf32>
    %72 = vector.multi_reduction <add>, %71, %cst_22 [1] : vector<16x16xf32> to vector<16xf32>
    %73 = vector.shape_cast %72 : vector<16xf32> to vector<16x1xf32>
    %74 = tpu.reciprocal %73 {approx = true} : vector<16x1xf32> -> vector<16x1xf32>
    %75 = vector.broadcast %74 : vector<16x1xf32> to vector<16x16xf32>
    %76 = arith.mulf %71, %75 : vector<16x16xf32>
    %77 = arith.truncf %76 : vector<16x16xf32> to vector<16x16xbf16>
    %cst_23 = arith.constant dense<0.000000e+00> : vector<16x32xf32>
    %78 = tpu.matmul %77, %62, %cst_23 {dimension_numbers = #tpu.dot_dimension_numbers<[1], [0], [0], [1], [0, 0, 1, 1], [], []>} : vector<16x16xbf16>, vector<16x32xbf16>, vector<16x32xf32> -> vector<16x32xf32>
    %c0_24 = arith.constant 0 : index
    %c64 = arith.constant 64 : index
    %79 = vector.load %arg15[%c0_24, %c64] : memref<16x128xf32, #tpu.memory_space<vmem>>, vector<16x32xf32>
    tpu.vector_store %arg15[%c0_24, %c64], %78 {strides = array<i32>} : memref<16x128xf32, #tpu.memory_space<vmem>>, vector<16x32xf32>,
    %80 = vector.extract_strided_slice %8 {offsets = [0, 96], sizes = [16, 32], strides = [1, 1]} : vector<16x128xf32> to vector<16x32xf32>
    %81 = arith.truncf %80 : vector<16x32xf32> to vector<16x32xbf16>
    %82 = vector.extract_strided_slice %9 {offsets = [0, 96], sizes = [16, 32], strides = [1, 1]} : vector<16x128xf32> to vector<16x32xf32>
    %83 = arith.truncf %82 : vector<16x32xf32> to vector<16x32xbf16>
    %84 = vector.extract_strided_slice %10 {offsets = [0, 96], sizes = [16, 32], strides = [1, 1]} : vector<16x128xf32> to vector<16x32xf32>
    %85 = arith.truncf %84 : vector<16x32xf32> to vector<16x32xbf16>
    %86 = tpu.transpose %83, [1, 0] : vector<16x32xbf16> -> vector<32x16xbf16>
    %cst_25 = arith.constant dense<0.000000e+00> : vector<16x16xf32>
    %87 = tpu.matmul %81, %86, %cst_25 {dimension_numbers = #tpu.dot_dimension_numbers<[1], [0], [0], [1], [0, 0, 1, 1], [], []>} : vector<16x32xbf16>, vector<32x16xbf16>, vector<16x16xf32> -> vector<16x16xf32>
    %cst_26 = arith.constant 0.176776692 : f32
    %88 = vector.broadcast %cst_26 : f32 to vector<16x16xf32>
    %89 = arith.mulf %87, %88 : vector<16x16xf32>
    %cst_27 = arith.constant dense<0xFF800000> : vector<16xf32>
    %90 = vector.multi_reduction <maximumf>, %89, %cst_27 [1] : vector<16x16xf32> to vector<16xf32>
    %91 = vector.shape_cast %90 : vector<16xf32> to vector<16x1xf32>
    %92 = vector.broadcast %91 : vector<16x1xf32> to vector<16x16xf32>
    %93 = arith.subf %89, %92 : vector<16x16xf32>
    %94 = math.exp %93 : vector<16x16xf32>
    %cst_28 = arith.constant dense<0.000000e+00> : vector<16xf32>
    %95 = vector.multi_reduction <add>, %94, %cst_28 [1] : vector<16x16xf32> to vector<16xf32>
    %96 = vector.shape_cast %95 : vector<16xf32> to vector<16x1xf32>
    %97 = tpu.reciprocal %96 {approx = true} : vector<16x1xf32> -> vector<16x1xf32>
    %98 = vector.broadcast %97 : vector<16x1xf32> to vector<16x16xf32>
    %99 = arith.mulf %94, %98 : vector<16x16xf32>
    %100 = arith.truncf %99 : vector<16x16xf32> to vector<16x16xbf16>
    %cst_29 = arith.constant dense<0.000000e+00> : vector<16x32xf32>
    %101 = tpu.matmul %100, %85, %cst_29 {dimension_numbers = #tpu.dot_dimension_numbers<[1], [0], [0], [1], [0, 0, 1, 1], [], []>} : vector<16x16xbf16>, vector<16x32xbf16>, vector<16x32xf32> -> vector<16x32xf32>
    %c0_30 = arith.constant 0 : index
    %c96 = arith.constant 96 : index
    %102 = vector.load %arg15[%c0_30, %c96] : memref<16x128xf32, #tpu.memory_space<vmem>>, vector<16x32xf32>
    tpu.vector_store %arg15[%c0_30, %c96], %101 {strides = array<i32>} : memref<16x128xf32, #tpu.memory_space<vmem>>, vector<16x32xf32>,
    %c0_31 = arith.constant 0 : index
    %c0_32 = arith.constant 0 : index
    %103 = vector.load %arg15[%c0_31, %c0_32] : memref<16x128xf32, #tpu.memory_space<vmem>>, vector<16x128xf32>
    %104 = arith.truncf %103 : vector<16x128xf32> to vector<16x128xbf16>
    %c0_33 = arith.constant 0 : index
    %c0_34 = arith.constant 0 : index
    %105 = vector.load %arg4[%c0_33, %c0_34] : memref<128x128xbf16, #tpu.memory_space<vmem>>, vector<128x128xbf16>
    %cst_35 = arith.constant dense<0.000000e+00> : vector<16x128xf32>
    %106 = tpu.matmul %104, %105, %cst_35 {dimension_numbers = #tpu.dot_dimension_numbers<[1], [0], [0], [1], [0, 0, 1, 1], [], []>} : vector<16x128xbf16>, vector<128x128xbf16>, vector<16x128xf32> -> vector<16x128xf32>
    %c0_36 = arith.constant 0 : index
    %c0_37 = arith.constant 0 : index
    %107 = vector.load %arg5[%c0_36, %c0_37] : memref<1x128xf32, #tpu.memory_space<vmem>>, vector<1x128xf32>
    %108 = vector.broadcast %107 : vector<1x128xf32> to vector<16x128xf32>
    %109 = arith.addf %106, %108 : vector<16x128xf32>
    %110 = arith.addf %1, %109 : vector<16x128xf32>
    %c0_38 = arith.constant 0 : index
    %c0_39 = arith.constant 0 : index
    %111 = vector.load %arg6[%c0_38, %c0_39] : memref<1x128xf32, #tpu.memory_space<vmem>>, vector<1x128xf32>
    %c0_40 = arith.constant 0 : index
    %c0_41 = arith.constant 0 : index
    %112 = vector.load %arg7[%c0_40, %c0_41] : memref<1x128xf32, #tpu.memory_space<vmem>>, vector<1x128xf32>
    %cst_42 = arith.constant dense<0.000000e+00> : vector<16xf32>
    %113 = vector.multi_reduction <add>, %110, %cst_42 [1] : vector<16x128xf32> to vector<16xf32>
    %114 = vector.shape_cast %113 : vector<16xf32> to vector<16x1xf32>
    %cst_43 = arith.constant 1.280000e+02 : f32
    %115 = vector.broadcast %cst_43 : f32 to vector<16x1xf32>
    %116 = arith.divf %114, %115 : vector<16x1xf32>
    %117 = vector.broadcast %116 : vector<16x1xf32> to vector<16x128xf32>
    %118 = arith.subf %110, %117 : vector<16x128xf32>
    %119 = arith.mulf %118, %118 : vector<16x128xf32>
    %cst_44 = arith.constant dense<0.000000e+00> : vector<16xf32>
    %120 = vector.multi_reduction <add>, %119, %cst_44 [1] : vector<16x128xf32> to vector<16xf32>
    %121 = vector.shape_cast %120 : vector<16xf32> to vector<16x1xf32>
    %cst_45 = arith.constant 1.280000e+02 : f32
    %122 = vector.broadcast %cst_45 : f32 to vector<16x1xf32>
    %123 = arith.divf %121, %122 : vector<16x1xf32>
    %124 = vector.broadcast %116 : vector<16x1xf32> to vector<16x128xf32>
    %125 = arith.subf %110, %124 : vector<16x128xf32>
    %cst_46 = arith.constant 9.99999974E-6 : f32
    %126 = vector.broadcast %cst_46 : f32 to vector<16x1xf32>
    %127 = arith.addf %123, %126 : vector<16x1xf32>
    %128 = math.rsqrt %127 : vector<16x1xf32>
    %129 = vector.broadcast %128 : vector<16x1xf32> to vector<16x128xf32>
    %130 = arith.mulf %125, %129 : vector<16x128xf32>
    %131 = vector.broadcast %111 : vector<1x128xf32> to vector<16x128xf32>
    %132 = arith.mulf %130, %131 : vector<16x128xf32>
    %133 = vector.broadcast %112 : vector<1x128xf32> to vector<16x128xf32>
    %134 = arith.addf %132, %133 : vector<16x128xf32>
    %135 = arith.truncf %134 : vector<16x128xf32> to vector<16x128xbf16>
    %c0_47 = arith.constant 0 : index
    %c0_48 = arith.constant 0 : index
    %136 = vector.load %arg8[%c0_47, %c0_48] : memref<128x256xbf16, #tpu.memory_space<vmem>>, vector<128x256xbf16>
    %cst_49 = arith.constant dense<0.000000e+00> : vector<16x256xf32>
    %137 = tpu.matmul %135, %136, %cst_49 {dimension_numbers = #tpu.dot_dimension_numbers<[1], [0], [0], [1], [0, 0, 1, 1], [], []>} : vector<16x128xbf16>, vector<128x256xbf16>, vector<16x256xf32> -> vector<16x256xf32>
    %c0_50 = arith.constant 0 : index
    %c0_51 = arith.constant 0 : index
    %138 = vector.load %arg9[%c0_50, %c0_51] : memref<1x256xf32, #tpu.memory_space<vmem>>, vector<1x256xf32>
    %139 = vector.broadcast %138 : vector<1x256xf32> to vector<16x256xf32>
    %140 = arith.addf %137, %139 : vector<16x256xf32>
    %141 = arith.negf %140 : vector<16x256xf32>
    %142 = math.exp %141 : vector<16x256xf32>
    %cst_52 = arith.constant 1.000000e+00 : f32
    %143 = vector.broadcast %cst_52 : f32 to vector<16x256xf32>
    %144 = arith.addf %143, %142 : vector<16x256xf32>
    %145 = arith.divf %143, %144 : vector<16x256xf32>
    %146 = arith.mulf %140, %145 : vector<16x256xf32>
    %147 = arith.truncf %146 : vector<16x256xf32> to vector<16x256xbf16>
    %c0_53 = arith.constant 0 : index
    %c0_54 = arith.constant 0 : index
    %148 = vector.load %arg10[%c0_53, %c0_54] : memref<256x128xbf16, #tpu.memory_space<vmem>>, vector<256x128xbf16>
    %cst_55 = arith.constant dense<0.000000e+00> : vector<16x128xf32>
    %149 = tpu.matmul %147, %148, %cst_55 {dimension_numbers = #tpu.dot_dimension_numbers<[1], [0], [0], [1], [0, 0, 1, 1], [], []>} : vector<16x256xbf16>, vector<256x128xbf16>, vector<16x128xf32> -> vector<16x128xf32>
    %c0_56 = arith.constant 0 : index
    %c0_57 = arith.constant 0 : index
    %150 = vector.load %arg11[%c0_56, %c0_57] : memref<1x128xf32, #tpu.memory_space<vmem>>, vector<1x128xf32>
    %151 = vector.broadcast %150 : vector<1x128xf32> to vector<16x128xf32>
    %152 = arith.addf %149, %151 : vector<16x128xf32>
    %153 = arith.addf %152, %134 : vector<16x128xf32>
    %c0_58 = arith.constant 0 : index
    %c0_59 = arith.constant 0 : index
    %154 = vector.load %arg12[%c0_58, %c0_59] : memref<1x128xf32, #tpu.memory_space<vmem>>, vector<1x128xf32>
    %c0_60 = arith.constant 0 : index
    %c0_61 = arith.constant 0 : index
    %155 = vector.load %arg13[%c0_60, %c0_61] : memref<1x128xf32, #tpu.memory_space<vmem>>, vector<1x128xf32>
    %cst_62 = arith.constant dense<0.000000e+00> : vector<16xf32>
    %156 = vector.multi_reduction <add>, %153, %cst_62 [1] : vector<16x128xf32> to vector<16xf32>
    %157 = vector.shape_cast %156 : vector<16xf32> to vector<16x1xf32>
    %cst_63 = arith.constant 1.280000e+02 : f32
    %158 = vector.broadcast %cst_63 : f32 to vector<16x1xf32>
    %159 = arith.divf %157, %158 : vector<16x1xf32>
    %160 = vector.broadcast %159 : vector<16x1xf32> to vector<16x128xf32>
    %161 = arith.subf %153, %160 : vector<16x128xf32>
    %162 = arith.mulf %161, %161 : vector<16x128xf32>
    %cst_64 = arith.constant dense<0.000000e+00> : vector<16xf32>
    %163 = vector.multi_reduction <add>, %162, %cst_64 [1] : vector<16x128xf32> to vector<16xf32>
    %164 = vector.shape_cast %163 : vector<16xf32> to vector<16x1xf32>
    %cst_65 = arith.constant 1.280000e+02 : f32
    %165 = vector.broadcast %cst_65 : f32 to vector<16x1xf32>
    %166 = arith.divf %164, %165 : vector<16x1xf32>
    %167 = vector.broadcast %159 : vector<16x1xf32> to vector<16x128xf32>
    %168 = arith.subf %153, %167 : vector<16x128xf32>
    %cst_66 = arith.constant 9.99999974E-6 : f32
    %169 = vector.broadcast %cst_66 : f32 to vector<16x1xf32>
    %170 = arith.addf %166, %169 : vector<16x1xf32>
    %171 = math.rsqrt %170 : vector<16x1xf32>
    %172 = vector.broadcast %171 : vector<16x1xf32> to vector<16x128xf32>
    %173 = arith.mulf %168, %172 : vector<16x128xf32>
    %174 = vector.broadcast %154 : vector<1x128xf32> to vector<16x128xf32>
    %175 = arith.mulf %173, %174 : vector<16x128xf32>
    %176 = vector.broadcast %155 : vector<1x128xf32> to vector<16x128xf32>
    %177 = arith.addf %175, %176 : vector<16x128xf32>
    %c0_67 = arith.constant 0 : index
    %c0_68 = arith.constant 0 : index
    %c0_69 = arith.constant 0 : index
    %178 = vector.load %arg14[%c0_67, %c0_68, %c0_69] : memref<1x16x128xf32, #tpu.memory_space<vmem>>, vector<1x16x128xf32>
    %179 = vector.shape_cast %178 : vector<1x16x128xf32> to vector<16x128xf32>
    %180 = vector.shape_cast %177 : vector<16x128xf32> to vector<1x16x128xf32>
    tpu.vector_store %arg14[%c0_67, %c0_68, %c0_69], %180 {strides = array<i32>} : memref<1x16x128xf32, #tpu.memory_space<vmem>>, vector<1x16x128xf32>,
    return
  }
  func.func @transform_0(%arg0: i32) -> (i32, i32, i32) {
    %c0_i32 = arith.constant 0 : i32
    %c0_i32_0 = arith.constant 0 : i32
    %c0_i32_1 = arith.constant 0 : i32
    return %arg0, %c0_i32, %c0_i32_0 : i32, i32, i32
  }
  func.func @transform_1(%arg0: i32) -> (i32, i32) {
    %c0_i32 = arith.constant 0 : i32
    %c0_i32_0 = arith.constant 0 : i32
    %c0_i32_1 = arith.constant 0 : i32
    return %c0_i32, %c0_i32_0 : i32, i32
  }
  func.func @transform_2(%arg0: i32) -> (i32, i32) {
    %c0_i32 = arith.constant 0 : i32
    %c0_i32_0 = arith.constant 0 : i32
    %c0_i32_1 = arith.constant 0 : i32
    return %c0_i32, %c0_i32_0 : i32, i32
  }
  func.func @transform_3(%arg0: i32) -> (i32, i32) {
    %c0_i32 = arith.constant 0 : i32
    %c0_i32_0 = arith.constant 0 : i32
    %c0_i32_1 = arith.constant 0 : i32
    return %c0_i32, %c0_i32_0 : i32, i32
  }
  func.func @transform_4(%arg0: i32) -> (i32, i32) {
    %c0_i32 = arith.constant 0 : i32
    %c0_i32_0 = arith.constant 0 : i32
    %c0_i32_1 = arith.constant 0 : i32
    return %c0_i32, %c0_i32_0 : i32, i32
  }
  func.func @transform_5(%arg0: i32) -> (i32, i32) {
    %c0_i32 = arith.constant 0 : i32
    %c0_i32_0 = arith.constant 0 : i32
    %c0_i32_1 = arith.constant 0 : i32
    return %c0_i32, %c0_i32_0 : i32, i32
  }
  func.func @transform_6(%arg0: i32) -> (i32, i32) {
    %c0_i32 = arith.constant 0 : i32
    %c0_i32_0 = arith.constant 0 : i32
    %c0_i32_1 = arith.constant 0 : i32
    return %c0_i32, %c0_i32_0 : i32, i32
  }
  func.func @transform_7(%arg0: i32) -> (i32, i32) {
    %c0_i32 = arith.constant 0 : i32
    %c0_i32_0 = arith.constant 0 : i32
    %c0_i32_1 = arith.constant 0 : i32
    return %c0_i32, %c0_i32_0 : i32, i32
  }
  func.func @transform_8(%arg0: i32) -> (i32, i32) {
    %c0_i32 = arith.constant 0 : i32
    %c0_i32_0 = arith.constant 0 : i32
    %c0_i32_1 = arith.constant 0 : i32
    return %c0_i32, %c0_i32_0 : i32, i32
  }
  func.func @transform_9(%arg0: i32) -> (i32, i32) {
    %c0_i32 = arith.constant 0 : i32
    %c0_i32_0 = arith.constant 0 : i32
    %c0_i32_1 = arith.constant 0 : i32
    return %c0_i32, %c0_i32_0 : i32, i32
  }
  func.func @transform_10(%arg0: i32) -> (i32, i32) {
    %c0_i32 = arith.constant 0 : i32
    %c0_i32_0 = arith.constant 0 : i32
    %c0_i32_1 = arith.constant 0 : i32
    return %c0_i32, %c0_i32_0 : i32, i32
  }
  func.func @transform_11(%arg0: i32) -> (i32, i32) {
    %c0_i32 = arith.constant 0 : i32
    %c0_i32_0 = arith.constant 0 : i32
    %c0_i32_1 = arith.constant 0 : i32
    return %c0_i32, %c0_i32_0 : i32, i32
  }
  func.func @transform_12(%arg0: i32) -> (i32, i32) {
    %c0_i32 = arith.constant 0 : i32
    %c0_i32_0 = arith.constant 0 : i32
    %c0_i32_1 = arith.constant 0 : i32
    return %c0_i32, %c0_i32_0 : i32, i32
  }
  func.func @transform_13(%arg0: i32) -> (i32, i32, i32) {
    %c0_i32 = arith.constant 0 : i32
    %c0_i32_0 = arith.constant 0 : i32
    %c0_i32_1 = arith.constant 0 : i32
    return %arg0, %c0_i32, %c0_i32_0 : i32, i32, i32
  }
}

</mosaic_0001>

<bundles_post_ra>
// kernel: tpu_custom_call.1
= control target key start
LH: loop header
LB: loop body
LE: loop exit
PB: predicated region body
PF: predicated region fallthrough
CT: control target
= control target key end

     0   :  { %s3928_s0 = inlined_call_operand.hbm [shape: f32[2,16,128], index: 0, kind: input, shape index: {}]   ;;  %s3929_s1 = inlined_call_operand.hbm [shape: bf16[128,384], index: 1, kind: input, shape index: {}]   ;;  %s3930_s2 = inlined_call_operand.hbm [shape: f32[1,384], index: 2, kind: input, shape index: {}]   ;;  %s3931_s3 = inlined_call_operand.hbm [shape: bf16[128,128], index: 3, kind: input, shape index: {}]   ;;  %s3932_s4 = inlined_call_operand.hbm [shape: f32[1,128], index: 4, kind: input, shape index: {}]   ;;  %s3933_s5 = inlined_call_operand.hbm [shape: f32[1,128], index: 5, kind: input, shape index: {}]   ;;  %s3934_s6 = inlined_call_operand.hbm [shape: f32[1,128], index: 6, kind: input, shape index: {}]   ;;  %s3935_s7 = inlined_call_operand.hbm [shape: bf16[128,256], index: 7, kind: input, shape index: {}]   ;;  %s3936_s8 = inlined_call_operand.hbm [shape: f32[1,256], index: 8, kind: input, shape index: {}]   ;;  %s3937_s9 = inlined_call_operand.hbm [shape: bf16[256,128], index: 9, kind: input, shape index: {}]   ;;  %s3938_s10 = inlined_call_operand.hbm [shape: f32[1,128], index: 10, kind: input, shape index: {}]   ;;  %s3939_s11 = inlined_call_operand.hbm [shape: f32[1,128], index: 11, kind: input, shape index: {}]   ;;  %s3940_s12 = inlined_call_operand.hbm [shape: f32[1,128], index: 12, kind: input, shape index: {}]   ;;  %s3941_s13 = inlined_call_operand.hbm [shape: f32[2,16,128], index: 13, kind: output, shape index: {}]  }
   0x1   :  { %3955 = sst [smem:[#allocation36_spill]] %s3928_s0 }
   0x2   :  { %3956 = sst [smem:[#allocation37_spill]] %s3929_s1 }
   0x3   :  { %3957 = sst [smem:[#allocation38_spill]] %s3930_s2 }
   0x4   :  { %3958 = sst [smem:[#allocation39_spill]] %s3941_s13 }
   0x5   :  { %18 = vsyncpa [#allocation4], 0 }
   0x6   :  { %20 = vsyncpa [#allocation4 + $0x1], 0 }
   0x7   :  { %21 = vsyncpa [#allocation7], 0 }
   0x8   :  { %22 = vsyncpa [#allocation10], 0 }
   0x9   :  { %23 = vsyncpa [#allocation13], 0 }
   0xa   :  { %24 = vsyncpa [#allocation16], 0 }
   0xb   :  { %25 = vsyncpa [#allocation19], 0 }
   0xc   :  { %26 = vsyncpa [#allocation22], 0 }
   0xd   :  { %27 = vsyncpa [#allocation5], 0 }
   0xe   :  { %29 = vsyncpa [#allocation5 + $0x1], 0  ;;  %s3310_s25 = smov 0   ;;  %s3312_s26 = smov 0  }
   0xf   :  { %s3314_s27 = smov 0   ;;  %s3316_s28 = smov 0  }
  0x10 LB: > { %3959 = sst [smem:[#allocation33_spill]] %s3198_s25  ;;  %s3212_s29 = smov [#allocation6]   ;;  %s3210_s28 = sphi %s3316_s28, %s4004_s28   ;;  %s3206_s27 = sphi %s3314_s27, %s4003_s27   ;;  %s3202_s26 = sphi %s3312_s26, %s4002_s26   ;;  %s3198_s25 = sphi %s3310_s25, %s4001_s25  }
  0x11   : > { %s356_s30 = sshll.u32 %s3212_s29, 4  ;;  %s3331_s14 = sadd.s32 4294967295, %s3210_s28   ;;  %s3336_s30 = int_to_ptr.vmem [resolvable:$true] %s356_s30 }
  0x12   : > { %3960 = sst [smem:[#allocation34_spill]] %s3331_s14  ;;  %p2172_p0 = scmp.ge.s32.totalorder %s3210_s28, 1 }
  0x13   : > { %p3948_p1 = scmp.eq.s32.totalorder %s3331_s14, 0  ;;  %p344_p2 = scmp.lt.s32.totalorder %s3210_s28, 3 }
  0x14   : > { %s3213_s16 = smov [#allocation9]   ;;  %s3214_s19 = smov [#allocation12]  }
  0x15   : > { %p3338_p3 = pnand %p2172_p0, %p344_p2  ;;  %s380_s17 = sshll.u32 %s3213_s16, 4  ;;  %s3351_s17 = int_to_ptr.vmem [resolvable:$true] %s380_s17 }
  0x16   : > { %s3353_s20 = sshll.u32 %s3214_s19, 4  ;;  %s3964_s1 = sld [smem:[#allocation37_spill]]  ;;  %s406_s20 = int_to_ptr.vmem [resolvable:$true] %s3353_s20 }
  0x17   : > { %s3961_s15 = scalar_select %p3338_p3, 1, 0 }
  0x18   : > { %p2489_p5 = pneg %p3338_p3 }
  0x19   : > { %3962 = sst [smem:[#allocation35_spill]] %s3961_s15 }
  0x1a   : > { %p3347_p6 = pnand %p2489_p5, %p3948_p1 }
  0x1c   : > { %s2754_s23 = scalar_lea.hbm %s3964_s1, 3072  ;;  %p3363_p8 = pneg %p3347_p6 }
  0x1d   : > { %p2755_p7 = scmp.ne.s32.totalorder %s3964_s1, %s2754_s23  ;;  %p2761_p11 = scmp.lt.u32.totalorder %s2754_s23, %s3964_s1 }
  0x1f   : > { %p2757_p9 = pnand %p3363_p8, %p2755_p7 }
  0x21   : > { %p2758_p10 = pneg %p2757_p9 }
  0x23   : > { %p2763_p12 = pnand %p2761_p11, %p2758_p10 }
  0x25   : > { %2766 = shalt.err (!%p2763_p12)
}
  0x26   : > { %s2767_s21 = scalar_lea.vmem %s3336_s30, 3072  ;;  %p2775_p5 = scmp.lt.s32.totalorder %s3336_s30, %s3336_s30 }
  0x27   : > { %p2768_p13 = scmp.ne.s32.totalorder %s3336_s30, %s2767_s21  ;;  %p2776_p4 = scmp.lt.s32.totalorder %s2767_s21, %s2767_s21 }
  0x29   : > { %p2770_p0 = pnand %p2768_p13, %p3363_p8  ;;  %p2777_p7 = por %p2776_p4, %p2775_p5 }
  0x2b   : > { %p2771_p2 = pneg %p2770_p0 }
  0x2d   : > { %p2778_p9 = pnand %p2777_p7, %p2771_p2 }
  0x2f   : > { %2781 = shalt.err (!%p2778_p9)
}
  0x30   : > { %s3215_s22 = smov 192   ;;  %s3216_s13 = smov 12  }
  0x31   : > { %2492 = dma.hbm_to_vmem [thread:$0]  (!%p3347_p6), %s3964_s1, 3072, %s3336_s30, [#allocation7], %s3215_s22, %s3215_s22, %s3216_s13  }
  0x32   : > { %s2782_s15 = scalar_lea.hbm %s3931_s3, 1024 }
  0x33   : > { %p2783_p4 = scmp.ne.s32.totalorder %s3931_s3, %s2782_s15  ;;  %p2789_p12 = scmp.lt.u32.totalorder %s2782_s15, %s3931_s3 }
  0x35   : > { %p2785_p10 = pnand %p2783_p4, %p3363_p8 }
  0x37   : > { %p2786_p11 = pneg %p2785_p10 }
  0x39   : > { %p2791_p13 = pnand %p2789_p12, %p2786_p11 }
  0x3b   : > { %2794 = shalt.err (!%p2791_p13)
}
  0x3c   : > { %s2795_s30 = scalar_lea.vmem %s3351_s17, 1024  ;;  %p2803_p7 = scmp.lt.s32.totalorder %s3351_s17, %s3351_s17 }
  0x3d   : > { %p2796_p0 = scmp.ne.s32.totalorder %s3351_s17, %s2795_s30  ;;  %p2804_p9 = scmp.lt.s32.totalorder %s2795_s30, %s2795_s30 }
  0x3f   : > { %p2798_p2 = pnand %p2796_p0, %p3363_p8  ;;  %p2805_p4 = por %p2804_p9, %p2803_p7 }
  0x41   : > { %p2799_p5 = pneg %p2798_p2 }
  0x43   : > { %p2806_p10 = pnand %p2805_p4, %p2799_p5 }
  0x45   : > { %2809 = shalt.err (!%p2806_p10)
}
  0x46   : > { %s3950_s0 = smov 64   ;;  %s3951_s25 = smov 4  }
  0x47   : > { %2498 = dma.hbm_to_vmem [thread:$0]  (!%p3347_p6), %s3931_s3, 1024, %s3351_s17, [#allocation10], %s3950_s0, %s3950_s0, %s3951_s25  }
  0x48   : > { %s2810_s23 = scalar_lea.hbm %s3933_s5, 16 }
  0x49   : > { %p2811_p11 = scmp.ne.s32.totalorder %s3933_s5, %s2810_s23  ;;  %p2817_p0 = scmp.lt.u32.totalorder %s2810_s23, %s3933_s5 }
  0x4b   : > { %p2813_p12 = pnand %p2811_p11, %p3363_p8 }
  0x4d   : > { %p2814_p13 = pneg %p2813_p12 }
  0x4f   : > { %p2819_p2 = pnand %p2817_p0, %p2814_p13 }
  0x51   : > { %2822 = shalt.err (!%p2819_p2)
}
  0x52   : > { %s2823_s30 = scalar_lea.vmem %s406_s20, 16  ;;  %s2830_s17 = scalar_lea.vmem %s406_s20, 32 }
  0x53   : > { %p2824_p5 = scmp.ne.s32.totalorder %s406_s20, %s2823_s30  ;;  %p2831_p4 = scmp.lt.s32.totalorder %s406_s20, %s406_s20 }
  0x54   : > { %p2832_p10 = scmp.lt.s32.totalorder %s2830_s17, %s2823_s30 }
  0x55   : > { %p2826_p7 = pnand %p2824_p5, %p3363_p8 }
  0x56   : > { %p2833_p1 = por %p2832_p10, %p2831_p4 }
  0x57   : > { %p2827_p9 = pneg %p2826_p7 }
  0x59   : > { %p2834_p3 = pnand %p2833_p1, %p2827_p9 }
  0x5b   : > { %2837 = shalt.err (!%p2834_p3)
}
  0x5c   : > { %2504 = dma.hbm_to_vmem [thread:$0]  (!%p3347_p6), %s3933_s5, 16, %s406_s20, [#allocation13]  }
  0x5d   : > { %s3219_s22 = smov [#allocation15]   ;;  %s2838_s29 = scalar_lea.hbm %s3935_s7, 2048 }
  0x5e   : > { %s426_s13 = sshll.u32 %s3219_s22, 4  ;;  %p2839_p11 = scmp.ne.s32.totalorder %s3935_s7, %s2838_s29  ;;  %s427_s13 = int_to_ptr.vmem [resolvable:$true] %s426_s13 }
  0x5f   : > { %p2845_p12 = scmp.lt.u32.totalorder %s2838_s29, %s3935_s7 }
  0x60   : > { %p2841_p1 = pnand %p2839_p11, %p3363_p8 }
  0x62   : > { %p2842_p3 = pneg %p2841_p1 }
  0x64   : > { %p2847_p13 = pnand %p2845_p12, %p2842_p3 }
  0x66   : > { %2850 = shalt.err (!%p2847_p13)
}
  0x67   : > { %s2851_s20 = scalar_lea.vmem %s427_s13, 2048  ;;  %p2859_p7 = scmp.lt.s32.totalorder %s427_s13, %s427_s13 }
  0x68   : > { %p2852_p0 = scmp.ne.s32.totalorder %s427_s13, %s2851_s20  ;;  %p2860_p9 = scmp.lt.s32.totalorder %s2851_s20, %s2851_s20 }
  0x6a   : > { %p2854_p2 = pnand %p2852_p0, %p3363_p8  ;;  %p2861_p4 = por %p2860_p9, %p2859_p7 }
  0x6c   : > { %p2855_p5 = pneg %p2854_p2 }
  0x6e   : > { %p2862_p10 = pnand %p2861_p4, %p2855_p5 }
  0x70   : > { %2865 = shalt.err (!%p2862_p10)
}
  0x71   : > { %s3952_s14 = smov 128   ;;  %s3953_s15 = smov 8  }
  0x72   : > { %2510 = dma.hbm_to_vmem [thread:$0]  (!%p3347_p6), %s3935_s7, 2048, %s427_s13, [#allocation16], %s3952_s14, %s3952_s14, %s3953_s15  }
  0x73   : > { %s3222_s24 = smov [#allocation18]   ;;  %s3223_s19 = smov [#allocation21]  }
  0x74   : > { %s450_s29 = sshll.u32 %s3222_s24, 4  ;;  %s475_s21 = sshll.u32 %s3223_s19, 4  ;;  %s451_s29 = int_to_ptr.vmem [resolvable:$true] %s450_s29  ;;  %s3450_s21 = int_to_ptr.vmem [resolvable:$true] %s475_s21 }
  0x75   : > { %s2866_s20 = scalar_lea.hbm %s3937_s9, 2048 }
  0x76   : > { %p2867_p11 = scmp.ne.s32.totalorder %s3937_s9, %s2866_s20  ;;  %p2873_p12 = scmp.lt.u32.totalorder %s2866_s20, %s3937_s9 }
  0x78   : > { %p2869_p1 = pnand %p2867_p11, %p3363_p8 }
  0x7a   : > { %p2870_p3 = pneg %p2869_p1 }
  0x7c   : > { %p2875_p13 = pnand %p2873_p12, %p2870_p3 }
  0x7e   : > { %2878 = shalt.err (!%p2875_p13)
}
  0x7f   : > { %s2879_s23 = scalar_lea.vmem %s451_s29, 2048  ;;  %p2887_p7 = scmp.lt.s32.totalorder %s451_s29, %s451_s29 }
  0x80   : > { %p2880_p0 = scmp.ne.s32.totalorder %s451_s29, %s2879_s23  ;;  %p2888_p9 = scmp.lt.s32.totalorder %s2879_s23, %s2879_s23 }
  0x82   : > { %p2882_p2 = pnand %p2880_p0, %p3363_p8  ;;  %p2889_p4 = por %p2888_p9, %p2887_p7 }
  0x84   : > { %p2883_p5 = pneg %p2882_p2 }
  0x86   : > { %p2890_p10 = pnand %p2889_p4, %p2883_p5 }
  0x88   : > { %2893 = shalt.err (!%p2890_p10)
}
  0x89   : > { %s3966_s0 = smov 4   ;;  %s3967_s25 = smov 64  }
  0x8a   : > { %2516 = dma.hbm_to_vmem [thread:$0]  (!%p3347_p6), %s3937_s9, 2048, %s451_s29, [#allocation19], %s3967_s25, %s3967_s25, %s3966_s0  }
  0x8b   : > { %s2894_s20 = scalar_lea.hbm %s3939_s11, 16 }
  0x8c   : > { %p2895_p11 = scmp.ne.s32.totalorder %s3939_s11, %s2894_s20  ;;  %p2901_p12 = scmp.lt.u32.totalorder %s2894_s20, %s3939_s11 }
  0x8e   : > { %p2897_p1 = pnand %p2895_p11, %p3363_p8 }
  0x90   : > { %p2898_p3 = pneg %p2897_p1 }
  0x92   : > { %p2903_p13 = pnand %p2901_p12, %p2898_p3 }
  0x94   : > { %2906 = shalt.err (!%p2903_p13)
}
  0x95   : > { %s2907_s29 = scalar_lea.vmem %s3450_s21, 16  ;;  %s2914_s0 = scalar_lea.vmem %s3450_s21, 32 }
  0x96   : > { %p2908_p0 = scmp.ne.s32.totalorder %s3450_s21, %s2907_s29  ;;  %p2915_p7 = scmp.lt.s32.totalorder %s3450_s21, %s3450_s21 }
  0x97   : > { %p2916_p9 = scmp.lt.s32.totalorder %s2914_s0, %s2907_s29 }
  0x98   : > { %p2910_p2 = pnand %p2908_p0, %p3363_p8 }
  0x99   : > { %p2917_p4 = por %p2916_p9, %p2915_p7 }
  0x9a   : > { %p2911_p5 = pneg %p2910_p2 }
  0x9c   : > { %p2918_p10 = pnand %p2917_p4, %p2911_p5 }
  0x9e   : > { %2921 = shalt.err (!%p2918_p10)
}
  0x9f   : > { %2522 = dma.hbm_to_vmem [thread:$0]  (!%p3347_p6), %s3939_s11, 16, %s3450_s21, [#allocation22]  }
  0xa0   : > { %s3224_s24 = smov [#allocation8]   ;;  %s3225_s30 = smov [#allocation11]  }
  0xa1   : > { %s370_s19 = sshll.u32 %s3224_s24, 4  ;;  %s394_s17 = sshll.u32 %s3225_s30, 4  ;;  %s371_s19 = int_to_ptr.vmem [resolvable:$true] %s370_s19  ;;  %s3497_s17 = int_to_ptr.vmem [resolvable:$true] %s394_s17 }
  0xa2   : > { %s3968_s2 = sld [smem:[#allocation38_spill]] }
  0xa8   : > { %s2922_s13 = scalar_lea.hbm %s3968_s2, 48 }
  0xa9   : > { %p2923_p11 = scmp.ne.s32.totalorder %s3968_s2, %s2922_s13  ;;  %p2929_p12 = scmp.lt.u32.totalorder %s2922_s13, %s3968_s2 }
  0xab   : > { %p2925_p1 = pnand %p2923_p11, %p3363_p8 }
  0xad   : > { %p2926_p3 = pneg %p2925_p1 }
  0xaf   : > { %p2931_p13 = pnand %p2929_p12, %p2926_p3 }
  0xb1   : > { %2934 = shalt.err (!%p2931_p13)
}
  0xb2   : > { %s2935_s14 = scalar_lea.vmem %s371_s19, 48  ;;  %s2942_s25 = scalar_lea.vmem %s371_s19, 64 }
  0xb3   : > { %p2936_p0 = scmp.ne.s32.totalorder %s371_s19, %s2935_s14  ;;  %p2943_p7 = scmp.lt.s32.totalorder %s371_s19, %s371_s19 }
  0xb4   : > { %p2944_p9 = scmp.lt.s32.totalorder %s2942_s25, %s2935_s14 }
  0xb5   : > { %p2938_p2 = pnand %p2936_p0, %p3363_p8 }
  0xb6   : > { %p2945_p4 = por %p2944_p9, %p2943_p7 }
  0xb7   : > { %p2939_p5 = pneg %p2938_p2 }
  0xb9   : > { %p2946_p10 = pnand %p2945_p4, %p2939_p5 }
  0xbb   : > { %2949 = shalt.err (!%p2946_p10)
}
  0xbc   : > { %2495 = dma.hbm_to_vmem [thread:$0]  (!%p3347_p6), %s3968_s2, 48, %s371_s19, [#allocation7]  }
  0xbd   : > { %s2950_s13 = scalar_lea.hbm %s3932_s4, 16 }
  0xbe   : > { %p2951_p11 = scmp.ne.s32.totalorder %s3932_s4, %s2950_s13  ;;  %p2957_p12 = scmp.lt.u32.totalorder %s2950_s13, %s3932_s4 }
  0xc0   : > { %p2953_p1 = pnand %p2951_p11, %p3363_p8 }
  0xc2   : > { %p2954_p3 = pneg %p2953_p1 }
  0xc4   : > { %p2959_p13 = pnand %p2957_p12, %p2954_p3 }
  0xc6   : > { %2962 = shalt.err (!%p2959_p13)
}
  0xc7   : > { %s2963_s19 = scalar_lea.vmem %s3497_s17, 16  ;;  %s2970_s14 = scalar_lea.vmem %s3497_s17, 32 }
  0xc8   : > { %p2964_p0 = scmp.ne.s32.totalorder %s3497_s17, %s2963_s19  ;;  %p2971_p7 = scmp.lt.s32.totalorder %s3497_s17, %s3497_s17 }
  0xc9   : > { %p2972_p9 = scmp.lt.s32.totalorder %s2970_s14, %s2963_s19 }
  0xca   : > { %p2966_p2 = pnand %p2964_p0, %p3363_p8 }
  0xcb   : > { %p2973_p4 = por %p2972_p9, %p2971_p7 }
  0xcc   : > { %p2967_p5 = pneg %p2966_p2 }
  0xce   : > { %p2974_p10 = pnand %p2973_p4, %p2967_p5 }
  0xd0   : > { %2977 = shalt.err (!%p2974_p10)
}
  0xd1   : > { %2501 = dma.hbm_to_vmem [thread:$0]  (!%p3347_p6), %s3932_s4, 16, %s3497_s17, [#allocation10]  }
  0xd2   : > { %s3226_s30 = smov [#allocation14]   ;;  %s3227_s22 = smov [#allocation17]  }
  0xd3   : > { %s416_s20 = sshll.u32 %s3226_s30, 4  ;;  %s440_s13 = sshll.u32 %s3227_s22, 4  ;;  %s417_s20 = int_to_ptr.vmem [resolvable:$true] %s416_s20  ;;  %s3541_s13 = int_to_ptr.vmem [resolvable:$true] %s440_s13 }
  0xd4   : > { %s2978_s0 = scalar_lea.hbm %s3934_s6, 16 }
  0xd5   : > { %p2979_p11 = scmp.ne.s32.totalorder %s3934_s6, %s2978_s0  ;;  %p2985_p12 = scmp.lt.u32.totalorder %s2978_s0, %s3934_s6 }
  0xd7   : > { %p2981_p1 = pnand %p2979_p11, %p3363_p8 }
  0xd9   : > { %p2982_p3 = pneg %p2981_p1 }
  0xdb   : > { %p2987_p13 = pnand %p2985_p12, %p2982_p3 }
  0xdd   : > { %2990 = shalt.err (!%p2987_p13)
}
  0xde   : > { %s2991_s25 = scalar_lea.vmem %s417_s20, 16  ;;  %s2998_s24 = scalar_lea.vmem %s417_s20, 32 }
  0xdf   : > { %p2992_p0 = scmp.ne.s32.totalorder %s417_s20, %s2991_s25  ;;  %p2999_p7 = scmp.lt.s32.totalorder %s417_s20, %s417_s20 }
  0xe0   : > { %p3000_p9 = scmp.lt.s32.totalorder %s2998_s24, %s2991_s25 }
  0xe1   : > { %p2994_p2 = pnand %p2992_p0, %p3363_p8 }
  0xe2   : > { %p3001_p4 = por %p3000_p9, %p2999_p7 }
  0xe3   : > { %p2995_p5 = pneg %p2994_p2 }
  0xe5   : > { %p3002_p10 = pnand %p3001_p4, %p2995_p5 }
  0xe7   : > { %3005 = shalt.err (!%p3002_p10)
}
  0xe8   : > { %2507 = dma.hbm_to_vmem [thread:$0]  (!%p3347_p6), %s3934_s6, 16, %s417_s20, [#allocation13]  }
  0xe9   : > { %s3006_s0 = scalar_lea.hbm %s3936_s8, 32 }
  0xea   : > { %p3007_p11 = scmp.ne.s32.totalorder %s3936_s8, %s3006_s0  ;;  %p3013_p12 = scmp.lt.u32.totalorder %s3006_s0, %s3936_s8 }
  0xec   : > { %p3009_p1 = pnand %p3007_p11, %p3363_p8 }
  0xee   : > { %p3010_p3 = pneg %p3009_p1 }
  0xf0   : > { %p3015_p13 = pnand %p3013_p12, %p3010_p3 }
  0xf2   : > { %3018 = shalt.err (!%p3015_p13)
}
  0xf3   : > { %s3019_s20 = scalar_lea.vmem %s3541_s13, 32  ;;  %p3027_p7 = scmp.lt.s32.totalorder %s3541_s13, %s3541_s13 }
  0xf4   : > { %p3020_p0 = scmp.ne.s32.totalorder %s3541_s13, %s3019_s20  ;;  %p3028_p9 = scmp.lt.s32.totalorder %s3019_s20, %s3019_s20 }
  0xf6   : > { %p3022_p2 = pnand %p3020_p0, %p3363_p8  ;;  %p3029_p4 = por %p3028_p9, %p3027_p7 }
  0xf8   : > { %p3023_p5 = pneg %p3022_p2 }
  0xfa   : > { %p3030_p10 = pnand %p3029_p4, %p3023_p5 }
  0xfc   : > { %3033 = shalt.err (!%p3030_p10)
}
  0xfd   : > { %2513 = dma.hbm_to_vmem [thread:$0]  (!%p3347_p6), %s3936_s8, 32, %s3541_s13, [#allocation16]  }
  0xfe   : > { %s3228_s30 = smov [#allocation20]   ;;  %s3229_s23 = smov [#allocation23]  }
  0xff   : > { %s464_s22 = sshll.u32 %s3228_s30, 4  ;;  %s486_s29 = sshll.u32 %s3229_s23, 4  ;;  %s465_s22 = int_to_ptr.vmem [resolvable:$true] %s464_s22  ;;  %s3584_s29 = int_to_ptr.vmem [resolvable:$true] %s486_s29 }
 0x100   : > { %s3034_s19 = scalar_lea.hbm %s3938_s10, 16 }
 0x101   : > { %p3035_p11 = scmp.ne.s32.totalorder %s3938_s10, %s3034_s19  ;;  %p3041_p12 = scmp.lt.u32.totalorder %s3034_s19, %s3938_s10 }
 0x103   : > { %p3037_p1 = pnand %p3035_p11, %p3363_p8 }
 0x105   : > { %p3038_p3 = pneg %p3037_p1 }
 0x107   : > { %p3043_p13 = pnand %p3041_p12, %p3038_p3 }
 0x109   : > { %3046 = shalt.err (!%p3043_p13)
}
 0x10a   : > { %s3047_s25 = scalar_lea.vmem %s465_s22, 16  ;;  %s3054_s24 = scalar_lea.vmem %s465_s22, 32 }
 0x10b   : > { %p3048_p0 = scmp.ne.s32.totalorder %s465_s22, %s3047_s25  ;;  %p3055_p7 = scmp.lt.s32.totalorder %s465_s22, %s465_s22 }
 0x10c   : > { %p3056_p9 = scmp.lt.s32.totalorder %s3054_s24, %s3047_s25 }
 0x10d   : > { %p3050_p2 = pnand %p3048_p0, %p3363_p8 }
 0x10e   : > { %p3057_p4 = por %p3056_p9, %p3055_p7 }
 0x10f   : > { %p3051_p5 = pneg %p3050_p2 }
 0x111   : > { %p3058_p10 = pnand %p3057_p4, %p3051_p5 }
 0x113   : > { %3061 = shalt.err (!%p3058_p10)
}
 0x114   : > { %2519 = dma.hbm_to_vmem [thread:$0]  (!%p3347_p6), %s3938_s10, 16, %s465_s22, [#allocation19]  }
 0x115   : > { %s3062_s19 = scalar_lea.hbm %s3940_s12, 16 }
 0x116   : > { %p3063_p11 = scmp.ne.s32.totalorder %s3940_s12, %s3062_s19  ;;  %p3069_p12 = scmp.lt.u32.totalorder %s3062_s19, %s3940_s12 }
 0x118   : > { %p3065_p1 = pnand %p3063_p11, %p3363_p8 }
 0x11a   : > { %p3066_p3 = pneg %p3065_p1 }
 0x11c   : > { %p3071_p13 = pnand %p3069_p12, %p3066_p3 }
 0x11e   : > { %3074 = shalt.err (!%p3071_p13)
}
 0x11f   : > { %s3075_s22 = scalar_lea.vmem %s3584_s29, 16  ;;  %s3082_s25 = scalar_lea.vmem %s3584_s29, 32 }
 0x120   : > { %p3076_p0 = scmp.ne.s32.totalorder %s3584_s29, %s3075_s22  ;;  %p3083_p7 = scmp.lt.s32.totalorder %s3584_s29, %s3584_s29 }
 0x121   : > { %p3084_p9 = scmp.lt.s32.totalorder %s3082_s25, %s3075_s22 }
 0x122   : > { %p3078_p2 = pnand %p3076_p0, %p3363_p8 }
 0x123   : > { %p3085_p4 = por %p3084_p9, %p3083_p7 }
 0x124   : > { %p3079_p5 = pneg %p3078_p2 }
 0x126   : > { %p3086_p10 = pnand %p3085_p4, %p3079_p5 }
 0x128   : > { %3089 = shalt.err (!%p3086_p10)
}
 0x129   : > { %s3969_s16 = sld [smem:[#allocation33_spill]]  ;;  %s3970_s23 = sld [smem:[#allocation34_spill]] }
 0x12a   : > { %2525 = dma.hbm_to_vmem [thread:$0]  (!%p3347_p6), %s3940_s12, 16, %s3584_s29, [#allocation22]  }
 0x12b   : > { %s2171_s18 = sadd.s32 4294967294, %s3210_s28   ;;  %s3630_s0 = sadd.s32 1, %s3210_s28  }
 0x12c   : > { %s39_s21 = ssub.s32 %s3210_s28, %s3630_s0  ;;  %s42_s19 = sadd.s32 1, %s3206_s27 }
 0x12d   : > { %p40_p8 = scmp.eq.s32.totalorder %s39_s21, 0  ;;  %p49_p11 = scmp.ne.s32.totalorder %s3206_s27, %s3202_s26 }
 0x12e   : > { %p50_p1 = scmp.eq.s32.totalorder %s3210_s28, 0  ;;  %p337_p2 = scmp.eq.s32.totalorder %s2171_s18, 1 }
 0x12f   : > { %p55_p3 = scmp.ne.s32.totalorder %s3202_s26, %s3969_s16  ;;  %p3972_p13 = scmp.eq.s32.totalorder %s3970_s23, 0 }
 0x130   : > { %s3641_s14 = scalar_select %p40_p8, %s3206_s27, %s42_s19  }
 0x131   : > { %p3643_p12 = por %p50_p1, %p49_p11  ;;  %p3649_p6 = por %p3972_p13, %p55_p3 }
 0x132   : > { %p331_p0 = scmp.eq.s32.totalorder %s3970_s23, 1  ;;  %p2546_p5 = scmp.lt.s32.totalorder %s3210_s28, 2 }
 0x133   : > { %s497_s20 = sand.u32 1, %s3206_s27   ;;  %p3660_p9 = por %p337_p2, %p55_p3 }
 0x134   : > { %p3656_p7 = por %p331_p0, %p49_p11  ;;  %s2186_s25 = sshll.u32 %s497_s20, 4 }
 0x135   : > { %s3975_s22 = scalar_select %p3660_p9, 1, 0 }
 0x136   : > { %s3974_s13 = scalar_select %p3656_p7, 1, 0 }
 0x137   : > { %s2291_s24 = sshll.u32 %s3210_s28, 8  ;;  %s3976_s21 = sld [smem:[#allocation36_spill]] }
 0x138   : > { %s501_s23 = scalar_lea.vmem [#allocation3], %s2186_s25  ;;  %p3674_p4 = pnand %p2546_p5, %p3643_p12 }
 0x139   : > { %s508_s18 = sshll.u32 %s501_s23, 4  ;;  %s3678_s1 = scalar_lea.sflag [#allocation4], %s497_s20  ;;  %s3670_s18 = int_to_ptr.vmem [resolvable:$true] %s508_s18 }
 0x13a   : > { %p3092_p8 = pneg %p3674_p4 }
 0x13d   : > { %s3668_s19 = scalar_lea.hbm %s3976_s21, %s2291_s24  ;;  %s3095_s17 = scalar_lea.hbm %s3976_s21, 512 }
 0x13e   : > { %s3090_s30 = scalar_lea.hbm %s3668_s19, 256  ;;  %p3096_p3 = scmp.lt.u32.totalorder %s3668_s19, %s3976_s21 }
 0x13f   : > { %p3091_p10 = scmp.ne.s32.totalorder %s3668_s19, %s3090_s30  ;;  %p3097_p12 = scmp.lt.u32.totalorder %s3095_s17, %s3090_s30 }
 0x140   : > { %p3099_p0 = scmp.lt.u32.totalorder %s3090_s30, %s3668_s19 }
 0x141   : > { %p3093_p11 = pnand %p3092_p8, %p3091_p10  ;;  %p3098_p13 = por %p3097_p12, %p3096_p3 }
 0x143   : > { %p3094_p1 = pneg %p3093_p11  ;;  %p3100_p2 = por %p3099_p0, %p3098_p13 }
 0x145   : > { %p3101_p5 = pnand %p3100_p2, %p3094_p1 }
 0x147   : > { %3104 = shalt.err (!%p3101_p5)
}
 0x148   : > { %s3105_s20 = scalar_lea.vmem %s3670_s18, 256  ;;  %s3230_s25 = smov [#allocation3]  }
 0x149   : > { %p3106_p10 = scmp.ne.s32.totalorder %s3670_s18, %s3105_s20  ;;  %s3110_s24 = sshll.u32 %s3230_s25, 4  ;;  %s3111_s24 = int_to_ptr.vmem [resolvable:$false] %s3110_s24 }
 0x14a   : > { %s3112_s16 = scalar_lea.vmem %s3111_s24, 512  ;;  %p3113_p7 = scmp.lt.s32.totalorder %s3670_s18, %s3111_s24 }
 0x14b   : > { %p3108_p11 = pnand %p3106_p10, %p3092_p8  ;;  %p3114_p3 = scmp.lt.s32.totalorder %s3112_s16, %s3105_s20 }
 0x14d   : > { %p3109_p9 = pneg %p3108_p11  ;;  %p3115_p12 = por %p3114_p3, %p3113_p7 }
 0x14f   : > { %p3116_p13 = pnand %p3115_p12, %p3109_p9 }
 0x151   : > { %3119 = shalt.err (!%p3116_p13)
}
 0x152   : > { %s3978_s30 = smov 8   ;;  %s3979_s17 = smov 128  }
 0x153   : > { %2529 = dma.hbm_to_vmem [thread:$0]  (!%p3674_p4), %s3668_s19, 256, %s3670_s18, %s3678_s1, %s3979_s17, %s3979_s17, %s3978_s30  }
 0x154   : > { %s3980_s23 = sld [smem:[#allocation35_spill]] }
 0x15a   : > { %p3981_p8 = scmp.ne.s32.totalorder %s3980_s23, 0 }
 0x15b   : > { %s3712_s25 = sand.u32 (!%p3981_p8), 1, %s3202_s26  }
 0x15c   : > { %520 = sbr.rel (%p3981_p8) target bundleno = 3415 (0xd57), region = 72  ;;  %s2190_s20 = sshll.u32 (!%p3981_p8), %s3712_s25, 4 }
 0x15d   : > { %s523_s24 = scalar_lea.sflag (!%p3981_p8), [#allocation4], %s3712_s25  ;;  %s3718_s15 = scalar_lea.vmem (!%p3981_p8), [#allocation3], %s2190_s20 }
 0x163   : > { %3165 = dma.done.wait (%p3649_p6), %s523_s24, 256  }
 0x164   : > { %3167 = vsyncadd (%p3649_p6), %s523_s24, 4294967040  ;;  %s3982_s1 = sld [smem:[#allocation34_spill]] }
 0x16a   : > { %p3983_p7 = scmp.eq.s32.totalorder %s3982_s1, 0 }
 0x16c   : > { %3169 = dma.done.wait (%p3983_p7), [#allocation7], 3120   ;;  %p3984_p9 = pmov %p3983_p7 }
 0x16d   : > { %p3985_p4 = pmov %p3983_p7 }
 0x16e   : > { %3171 = vsyncadd (%p3984_p9), [#allocation7], 4294964176 }
 0x16f   : > { %3173 = dma.done.wait (%p3985_p4), [#allocation10], 1040   ;;  %p3986_p1 = pmov %p3985_p4 }
 0x171   : > { %3175 = vsyncadd (%p3986_p1), [#allocation10], 4294966256  ;;  %p3987_p0 = pmov %p3986_p1 }
 0x173   : > { %3177 = dma.done.wait (%p3987_p0), [#allocation13], 32   ;;  %p3988_p2 = pmov %p3987_p0 }
 0x174   : > { %p3989_p6 = pmov %p3987_p0 }
 0x175   : > { %3179 = vsyncadd (%p3988_p2), [#allocation13], 4294967264 }
 0x176   : > { %3181 = dma.done.wait (%p3989_p6), [#allocation16], 2080   ;;  %p3990_p5 = pmov %p3987_p0 }
 0x177   : > { %p3991_p10 = pmov %p3987_p0 }
 0x178   : > { %3183 = vsyncadd (%p3990_p5), [#allocation16], 4294965216 }
 0x179   : > { %3185 = dma.done.wait (%p3991_p10), [#allocation19], 2064   ;;  %p3992_p11 = pmov %p3987_p0 }
 0x17a   : > { %p3993_p3 = pmov %p3987_p0 }
 0x17b   : > { %3187 = vsyncadd (%p3992_p11), [#allocation19], 4294965232 }
 0x17c   : > { %3189 = dma.done.wait (%p3993_p3), [#allocation22], 32   ;;  %p3994_p12 = pmov %p3987_p0 }
 0x17d   : > { %v3231_v0 = vmov 0   ;;  %v3232_v1 = vmov 0.0   ;;  %v2618_v2 = vld [vmem:[#allocation6 + $0x4] ss:$12 sps:$4 sm:$0xff]   ;;  %v2620_v3 = vld [vmem:[#allocation6] ss:$12 sps:$4 sm:$0xff]   ;;  %v655_v29 = vlaneseq }
 0x17e   : > { %3191 = vsyncadd (%p3994_p12), [#allocation22], 4294967264  ;;  %830 = vmatprep.mubr.bf16.mxu0 %v3231_v0  ;;  %2349 = vmatprep.subr.bf16.mxu1 %v3232_v1  ;;  %v2621_v4 = vld [vmem:[#allocation6 + $0x1c] ss:$12 sps:$4 sm:$0xff]   ;;  %v2623_v5 = vld [vmem:[#allocation6 + $0x18] ss:$12 sps:$4 sm:$0xff]  }
 0x17f   : > { %798 = vmatprep.subr.bf16.mxu0 %v2618_v2  ;;  %v2624_v6 = vld [vmem:[#allocation6 + $0x34] ss:$12 sps:$4 sm:$0xff]   ;;  %v2626_v7 = vld [vmem:[#allocation6 + $0x30] ss:$12 sps:$4 sm:$0xff]   ;;  %v2627_v8 = vld [vmem:[#allocation6 + $0x4c] ss:$12 sps:$4 sm:$0xff]  }
 0x180   : > { %799 = vmatpush1.bf16.msra.mxu0 %v2620_v3  ;;  %v2629_v9 = vld [vmem:[#allocation6 + $0x48] ss:$12 sps:$4 sm:$0xff]   ;;  %v2630_v10 = vld [vmem:[#allocation6 + $0x64] ss:$12 sps:$4 sm:$0xff]   ;;  %v2643_v12 = vld [vmem:[#allocation6 + $0x20] ss:$12 sps:$4 sm:$0xff]  }
 0x181   : > { %800 = vmatprep.subr.bf16.mxu0 %v2621_v4  ;;  %v2642_v11 = vld [vmem:[#allocation6 + $0x8] ss:$12 sps:$4 sm:$0xff]   ;;  %v2632_v13 = vld [vmem:[#allocation6 + $0x60] ss:$12 sps:$4 sm:$0xff]   ;;  %v2635_v15 = vld [vmem:[#allocation6 + $0x78] ss:$12 sps:$4 sm:$0xff]  }
 0x182   : > { %2350 = vmatpush3.bf16.msra.mxu1 %v2642_v11  ;;  %v2633_v14 = vld [vmem:[#allocation6 + $0x7c] ss:$12 sps:$4 sm:$0xff]   ;;  %v2636_v16 = vld [vmem:[#allocation6 + $0x94] ss:$12 sps:$4 sm:$0xff]   ;;  %v2644_v17 = vld [vmem:[#allocation6 + $0x38] ss:$12 sps:$4 sm:$0xff]  }
 0x183   : > { %2351 = vmatprep.subr.bf16.mxu1 %v3232_v1  ;;  %v2645_v18 = vld [vmem:[#allocation6 + $0x50] ss:$12 sps:$4 sm:$0xff]   ;;  %v2639_v20 = vld [vmem:[#allocation6 + $0xac] ss:$12 sps:$4 sm:$0xff]   ;;  %v2646_v21 = vld [vmem:[#allocation6 + $0x68] ss:$12 sps:$4 sm:$0xff]  }
 0x184   : > { %801 = vmatpush1.bf16.msra.mxu0 %v2623_v5  ;;  %v2638_v19 = vld [vmem:[#allocation6 + $0x90] ss:$12 sps:$4 sm:$0xff]   ;;  %v2641_v22 = vld [vmem:[#allocation6 + $0xa8] ss:$12 sps:$4 sm:$0xff]   ;;  %v2647_v25 = vld [vmem:[#allocation6 + $0x80] ss:$12 sps:$4 sm:$0xff]  }
 0x185   : > { %802 = vmatprep.subr.bf16.mxu0 %v2624_v6  ;;  %v3754_v23 = vld [vmem:[%s3718_s15] sm:$0xff]  ;;  %v3757_v24 = vld [vmem:[%s3718_s15 + $0x8] sm:$0xff]  ;;  %vm3233_vm0 = vmmov 0   ;;  %v3773_v30 = vshrl.u32 %v655_v29, 7  ;;  %vm885_vm1 = vcmask 261120   ;;  %vm935_vm2 = vcmask 130048  }
 0x186   : > { %2352 = vmatpush3.bf16.msra.mxu1 %v2643_v12  ;;  %v620_v26 = vpack.c.bf16 %v3757_v24, %v3754_v23  ;;  %v2648_v27 = vld [vmem:[#allocation6 + $0x98] ss:$12 sps:$4 sm:$0xff]   ;;  %v2649_v28 = vld [vmem:[#allocation6 + $0xb0] ss:$12 sps:$4 sm:$0xff]   ;;  %2365 = vmatprep.mubr.msk.bf16.mxu1 %vm3233_vm0, %v3232_v1  ;;  %v653_v32 = vld [vmem:[#allocation8] sm:$0x7] }
 0x187   : > { %2353 = vmatprep.subr.bf16.mxu1 %v3232_v1  ;;  %v657_v31 = vsub.s32 0, %v3773_v30  ;;  %v661_v33 = vsub.s32 1, %v3773_v30  ;;  %v665_v47 = vsub.s32 2, %v3773_v30  ;;  %s3234_s29 = smov 96   ;;  %s3235_s19 = smov 32   ;;  %vm1139_vm3 = vcmask 523520  }
 0x188   : > { %803 = vmatpush1.bf16.msra.mxu0 %v2626_v7  ;;  %s3236_s18 = smov 64   ;;  %vm1273_vm4 = vcmask 785920   ;;  %vm1407_vm5 = vcmask 1048320   ;;  %s2292_s16 = sshll.u32 %s3982_s1, 8 }
 0x189   : > { %804 = vmatprep.subr.bf16.mxu0 %v2627_v8  ;;  %v658_v34 = vrot.slane %v653_v32, %v657_v31  ;;  %v662_v36 = vrot.slane %v653_v32, %v661_v33  ;;  %v666_v48 = vrot.slane %v653_v32, %v665_v47  ;;  %s616_s30 = scalar_lea.vmem [#allocation24], %s2190_s20  ;;  %s3995_s15 = sld [smem:[#allocation39_spill]] }
 0x18a   : > { %2354 = vmatpush3.bf16.msra.mxu1 %v2644_v17  ;;  %s1984_s17 = sshll.u32 %s616_s30, 4  ;;  %p3996_p8 = scmp.ne.s32.totalorder %s3974_s13, 0  ;;  %s3884_s17 = int_to_ptr.vmem [resolvable:$true] %s1984_s17 }
 0x18b   : > { %2355 = vmatprep.subr.bf16.mxu1 %v3232_v1  ;;  %s3120_s1 = scalar_lea.vmem %s3884_s17, 256  ;;  %s3237_s20 = smov [#allocation24]  }
 0x18c   : > { %805 = vmatpush1.bf16.msra.mxu0 %v2629_v9  ;;  %p3121_p13 = scmp.ne.s32.totalorder %s3884_s17, %s3120_s1 }
 0x18d   : > { %806 = vmatprep.subr.bf16.mxu0 %v2630_v10 }
 0x18e   : > { %2356 = vmatpush3.bf16.msra.mxu1 %v2645_v18  ;;  %p3122_p7 = pnand %p3121_p13, %p3996_p8 }
 0x18f   : > { %2357 = vmatprep.subr.bf16.mxu1 %v3232_v1 }
 0x190   : > { %807 = vmatpush1.bf16.msra.mxu0 %v2632_v13  ;;  %p3123_p9 = pneg %p3122_p7 }
 0x191   : > { %808 = vmatprep.subr.bf16.mxu0 %v2633_v14 }
 0x192   : > { %2358 = vmatpush3.bf16.msra.mxu1 %v2646_v21 }
 0x193   : > { %2359 = vmatprep.subr.bf16.mxu1 %v3232_v1 }
 0x194   : > { %809 = vmatpush1.bf16.msra.mxu0 %v2635_v15 }
 0x195   : > { %810 = vmatprep.subr.bf16.mxu0 %v2636_v16 }
 0x196   : > { %2360 = vmatpush3.bf16.msra.mxu1 %v2647_v25 }
 0x197   : > { %2361 = vmatprep.subr.bf16.mxu1 %v3232_v1 }
 0x198   : > { %811 = vmatpush1.bf16.msra.mxu0 %v2638_v19 }
 0x199   : > { %812 = vmatprep.subr.bf16.mxu0 %v2639_v20 }
 0x19a   : > { %2362 = vmatpush3.bf16.msra.mxu1 %v2648_v27 }
 0x19b   : > { %2363 = vmatprep.subr.bf16.mxu1 %v3232_v1 }
 0x19c   : > { %813 = vmatpush1.bf16.msra.mxu0 %v2641_v22 }
 0x19d   : > { %2393 = vmatprep.subr.bf16.mxu0 %v3232_v1 }
 0x19e   : > { %2364 = vmatpush3.bf16.msra.mxu1 %v2649_v28 }
 0x19f   : > { %831 = vmatmul.mubr.bf16.vlgmr.msra.gmra.mrb[0].mxu0 %v620_v26  ;;  %2369 = vmatprep.subr.bf16.mxu1 %v3232_v1 }
 0x1a0   : > { %2395 = vmatprep.mubr.msk.bf16.mxu0 %vm3233_vm0, %v3232_v1 }
 0x1a1   : > { %2366 = vmatmul.mubr.bf16.vlgmr.msra.gmra.mrb[0].mxu1 %v620_v26 }
 0x1a2   : > { %2371 = vmatprep.mubr.msk.bf16.mxu1 %vm3233_vm0, %v3232_v1 }
 0x272   : > { %v832_v35 = vpop.f32.mrb[0].mxu0 }
 0x273   : > { %v834_v37 = vpop.f32.mrb[1].mxu0  ;;  %v833_v39 = vadd.f32 %v832_v35, %v658_v34 }
 0x274   : > { %v836_v38 = vpop.f32.mrb[2].mxu0  ;;  %v835_v42 = vadd.f32 %v834_v37, %v662_v36  ;;  %v875_v49 = vpop.f32.mrb[0].mxu1 }
 0x275   : > { %v837_v40 = vadd.f32 %v836_v38, %v658_v34  ;;  %v838_v41 = vpop.f32.mrb[3].mxu0  ;;  %v876_v50 = vadd.f32 %v875_v49, %v666_v48  ;;  %v2367_v51 = vpop.f32.mrb[1].mxu1 }
 0x276   : > { %v839_v43 = vadd.f32 %v838_v41, %v662_v36  ;;  %v878_v52 = vpop.f32.mrb[2].mxu1 }
 0x277   : > { %v882_v44 = vpack.c.bf16 %v837_v40, %v833_v39  ;;  %v879_v53 = vadd.f32 %v878_v52, %v666_v48  ;;  %v2368_v54 = vpop.f32.mrb[3].mxu1 }
 0x278   : > { %v883_v45 = vpack.c.bf16 %v839_v43, %v835_v42 }
 0x279   : > { %v3787_v55 = vpack.c.bf16 %v879_v53, %v876_v50 }
 0x27a   : > { %v890_v46 = vsel %vm885_vm1, %v883_v45, 0 }
 0x27b   : > { %2370 = vmatpush3.bf16.xpose.msra.mxu1 %v890_v46 }
 0x27c   : > { %2375 = vmatprep.subr.bf16.mxu1 %v3232_v1 }
 0x282   : > { %2372 = vmatmul.mubr.msk.bf16.vlgmr.msra.gmra.mrb[4].mxu1 %vm885_vm1, %v882_v44 }
 0x283   : > { %2377 = vmatprep.mubr.msk.bf16.mxu1 %vm3233_vm0, %v3232_v1  ;;  %2376 = vmatpush3.bf16.msra.mxu1 %v3787_v55 }
 0x284   : > { %2381 = vmatprep.subr.bf16.mxu1 %v3232_v1 }
 0x355   : > { %v926_v56 = vpop.f32.mrb[4].mxu1 }
 0x356   : > { %v933_v57 = vmul.f32 0.17677669, %v926_v56  ;;  %v2373_v58 = vpop.f32.mrb[5].mxu1 }
 0x357   : > { %v929_v59 = vpop.f32.mrb[6].mxu1 }
 0x358   : > { %v934_v60 = vmul.f32 0.17677669, %v929_v59  ;;  %v2374_v61 = vpop.f32.mrb[7].mxu1  ;;  %v936_v62 = vsel %vm935_vm2, %v933_v57, -inf }
 0x359   : > { %937 = vmax.xlane.f32.xlu0 %v936_v62 }
 0x35a   : > { %v939_v63 = vsel %vm935_vm2, %v934_v60, -inf }
 0x35d   : > { %940 = vmax.xlane.f32.xlu0 %v939_v63 }
 0x373   : > { %1009 = vrot.lane.b32.xlu0 %v883_v45, %s3234_s29 }
 0x377   : > { %1278 = vrot.lane.b32.xlu0 %v883_v45, %s3235_s19 }
 0x3e6   : > { %v938_v2 = vpop.xlane.xlu0 %937 }
 0x3e7   : > { %v942_v3 = vsub.f32 %v933_v57, %v938_v2 }
 0x3e9   : > { %v944_v4 = vmul.f32 1.442695, %v942_v3 }
 0x3ea   : > { %v941_v5 = vpop.xlane.xlu0 %940 }
 0x3eb   : > { %2698 = vpow2.f32 %v944_v4  ;;  %v943_v6 = vsub.f32 %v934_v60, %v941_v5 }
 0x3ed   : > { %v946_v7 = vmul.f32 1.442695, %v943_v6 }
 0x3ee   : > { %v1010_v15 = vpop.permute.xlu0 %1009 }
 0x3ef   : > { %2700 = vpow2.f32 %v946_v7  ;;  %v1015_v26 = vsel %vm885_vm1, %v1010_v15, 0 }
 0x3f2   : > { %v1279_v22 = vpop.permute.xlu0 %1278 }
 0x3f3   : > { %v1284_v28 = vsel %vm885_vm1, %v1279_v22, 0 }
 0x3f5   : > { %v2699_v8 = vpop.eup %2698 }
 0x3f6   : > { %v948_v9 = vsel %vm935_vm2, %v2699_v8, 0.0 }
 0x3f7   : > { %949 = vadd.xlane.f32.xlu1 %v948_v9 }
 0x3f9   : > { %v2701_v10 = vpop.eup %2700 }
 0x3fa   : > { %v951_v11 = vsel %vm935_vm2, %v2701_v10, 0.0 }
 0x3fb   : > { %952 = vadd.xlane.f32.xlu1 %v951_v11 }
 0x40c   : > { %1006 = vrot.lane.b32.xlu1 %v882_v44, %s3234_s29 }
 0x410   : > { %1144 = vrot.lane.b32.xlu1 %v883_v45, %s3236_s18 }
 0x414   : > { %1142 = vrot.lane.b32.xlu1 %v882_v44, %s3236_s18 }
 0x418   : > { %1276 = vrot.lane.b32.xlu1 %v882_v44, %s3235_s19 }
 0x484   : > { %v950_v12 = vpop.xlane.xlu1 %949 }
 0x485   : > { %2702 = vrcp.f32 %v950_v12 }
 0x488   : > { %v953_v13 = vpop.xlane.xlu1 %952 }
 0x489   : > { %2704 = vrcp.f32 %v953_v13 }
 0x48c   : > { %v1007_v14 = vpop.permute.xlu1 %1006 }
 0x48f   : > { %v2703_v17 = vpop.eup %2702 }
 0x490   : > { %v1145_v16 = vpop.permute.xlu1 %1144  ;;  %v956_v20 = vmul.f32 %v2703_v17, %v2699_v8 }
 0x491   : > { %v1150_v18 = vsel %vm885_vm1, %v1145_v16, 0 }
 0x492   : > { %2394 = vmatpush3.bf16.xpose.msra.mxu0 %v1150_v18 }
 0x493   : > { %v2705_v19 = vpop.eup %2704  ;;  %2405 = vmatprep.subr.bf16.mxu0 %v3232_v1 }
 0x494   : > { %v957_v21 = vmul.f32 %v2705_v19, %v2701_v10  ;;  %v1143_v27 = vpop.permute.xlu1 %1142 }
 0x496   : > { %v958_v25 = vpack.c.bf16 %v957_v21, %v956_v20 }
 0x498   : > { %2378 = vmatmul.mubr.msk.bf16.vlgmr.msra.gmra.mrb[8].mxu1 %vm935_vm2, %v958_v25  ;;  %v1277_v29 = vpop.permute.xlu1 %1276 }
 0x499   : > { %2382 = vmatpush3.bf16.xpose.msra.mxu1 %v1015_v26  ;;  %2396 = vmatmul.mubr.msk.bf16.vlgmr.msra.gmra.mrb[4].mxu0 %vm885_vm1, %v1143_v27 }
 0x49a   : > { %2406 = vmatpush3.bf16.xpose.msra.mxu0 %v1284_v28  ;;  %2383 = vmatprep.mubr.msk.bf16.mxu1 %vm3233_vm0, %v3232_v1 }
 0x49b   : > { %2407 = vmatprep.mubr.msk.bf16.mxu0 %vm3233_vm0, %v3232_v1  ;;  %2387 = vmatprep.subr.bf16.mxu1 %v3232_v1 }
 0x49c   : > { %2417 = vmatprep.subr.bf16.mxu0 %v3232_v1 }
 0x4a0   : > { %2384 = vmatmul.mubr.msk.bf16.vlgmr.msra.gmra.mrb[12].mxu1 %vm885_vm1, %v1007_v14 }
 0x4a1   : > { %2408 = vmatmul.mubr.msk.bf16.vlgmr.msra.gmra.mrb[8].mxu0 %vm885_vm1, %v1277_v29  ;;  %2389 = vmatprep.mubr.msk.bf16.mxu1 %vm3233_vm0, %v3232_v1 }
 0x4a2   : > { %2433 = vmatprep.mubr.msk.bf16.mxu0 %vm3233_vm0, %v3232_v1 }
 0x56b   : > { %v996_v32 = vpop.f32.mrb[8].mxu1 }
 0x56c   : > { %1003 = vst.msk [vmem:[#allocation2] sm:$0xff] %vm885_vm1, %v996_v32  ;;  %v2379_v34 = vpop.f32.mrb[9].mxu1  ;;  %v1186_v35 = vpop.f32.mrb[4].mxu0 }
 0x56d   : > { %v999_v36 = vpop.f32.mrb[10].mxu1  ;;  %v2397_v37 = vpop.f32.mrb[5].mxu0  ;;  %v1193_v45 = vmul.f32 0.17677669, %v1186_v35 }
 0x56e   : > { %1004 = vst.msk [vmem:[#allocation2 + $0x8] sm:$0xff] %vm885_vm1, %v999_v36  ;;  %v2380_v38 = vpop.f32.mrb[11].mxu1  ;;  %v1189_v39 = vpop.f32.mrb[6].mxu0 }
 0x56f   : > { %v2398_v40 = vpop.f32.mrb[7].mxu0  ;;  %v1194_v56 = vmul.f32 0.17677669, %v1189_v39  ;;  %v1195_v57 = vsel %vm935_vm2, %v1193_v45, -inf }
 0x571   : > { %v1198_v60 = vsel %vm935_vm2, %v1194_v56, -inf }
 0x573   : > { %v1051_v41 = vpop.f32.mrb[12].mxu1 }
 0x574   : > { %v1058_v42 = vmul.f32 0.17677669, %v1051_v41  ;;  %v2385_v43 = vpop.f32.mrb[13].mxu1  ;;  %v1320_v44 = vpop.f32.mrb[8].mxu0 }
 0x575   : > { %v1054_v46 = vpop.f32.mrb[14].mxu1  ;;  %v2409_v47 = vpop.f32.mrb[9].mxu0  ;;  %v1327_v59 = vmul.f32 0.17677669, %v1320_v44 }
 0x576   : > { %v1059_v48 = vmul.f32 0.17677669, %v1054_v46  ;;  %v2386_v49 = vpop.f32.mrb[15].mxu1  ;;  %v1323_v50 = vpop.f32.mrb[10].mxu0  ;;  %v1060_v51 = vsel %vm935_vm2, %v1058_v42, -inf }
 0x577   : > { %v2410_v52 = vpop.f32.mrb[11].mxu0  ;;  %1061 = vmax.xlane.f32.xlu0 %v1060_v51  ;;  %v1328_v53 = vmul.f32 0.17677669, %v1323_v50  ;;  %v1329_v61 = vsel %vm935_vm2, %v1327_v59, -inf }
 0x578   : > { %v1063_v54 = vsel %vm935_vm2, %v1059_v48, -inf }
 0x579   : > { %1064 = vmax.xlane.f32.xlu1 %v1063_v54  ;;  %v1332_v58 = vsel %vm935_vm2, %v1328_v53, -inf }
 0x57b   : > { %1196 = vmax.xlane.f32.xlu0 %v1195_v57 }
 0x57d   : > { %1333 = vmax.xlane.f32.xlu1 %v1332_v58 }
 0x57f   : > { %1199 = vmax.xlane.f32.xlu0 %v1198_v60  ;;  %v2651_v60 = vld [vmem:[#allocation9 + $0x8] sm:$0xff]  }
 0x583   : > { %1330 = vmax.xlane.f32.xlu0 %v1329_v61  ;;  %v2652_v61 = vld [vmem:[#allocation9 + $0x10] sm:$0xff]  }
 0x604   : > { %v1062_v62 = vpop.xlane.xlu0 %1061 }
 0x605   : > { %v1066_v9 = vsub.f32 %v1058_v42, %v1062_v62  ;;  %v2653_v62 = vld [vmem:[#allocation9 + $0x18] sm:$0xff]  }
 0x606   : > { %v1065_v63 = vpop.xlane.xlu1 %1064 }
 0x607   : > { %v1067_v10 = vsub.f32 %v1059_v48, %v1065_v63  ;;  %v1068_v15 = vmul.f32 1.442695, %v1066_v9  ;;  %v2654_v63 = vld [vmem:[#allocation9 + $0x20] sm:$0xff]  }
 0x608   : > { %v1197_v2 = vpop.xlane.xlu0 %1196 }
 0x609   : > { %v1201_v3 = vsub.f32 %v1193_v45, %v1197_v2  ;;  %v1070_v16 = vmul.f32 1.442695, %v1067_v10  ;;  %v2657_v10 = vld [vmem:[#allocation9 + $0x38] sm:$0xff]  }
 0x60a   : > { %v1334_v4 = vpop.xlane.xlu1 %1333 }
 0x60b   : > { %v1203_v5 = vmul.f32 1.442695, %v1201_v3  ;;  %v1336_v6 = vsub.f32 %v1328_v53, %v1334_v4 }
 0x60c   : > { %v1200_v7 = vpop.xlane.xlu0 %1199 }
 0x60d   : > { %2706 = vpow2.f32 %v1203_v5  ;;  %v1202_v8 = vsub.f32 %v1194_v56, %v1200_v7  ;;  %v1339_v11 = vmul.f32 1.442695, %v1336_v6  ;;  %v2655_v5 = vld [vmem:[#allocation9 + $0x28] sm:$0xff]   ;;  %v2656_v6 = vld [vmem:[#allocation9 + $0x30] sm:$0xff]  }
 0x60f   : > { %v1205_v12 = vmul.f32 1.442695, %v1202_v8 }
 0x610   : > { %v1331_v13 = vpop.xlane.xlu0 %1330 }
 0x611   : > { %2708 = vpow2.f32 %v1205_v12  ;;  %v1335_v14 = vsub.f32 %v1327_v59, %v1331_v13  ;;  %v2650_v59 = vld [vmem:[#allocation9] sm:$0xff]  }
 0x612   : > { %2710 = vpow2.f32 %v1339_v11  ;;  %2418 = vmatpush3.bf16.msra.mxu0 %v2650_v59  ;;  %v2679_v59 = vld [vmem:[#allocation15 + $0x70] ss:$8 sps:$4 sm:$0xff]  }
 0x613   : > { %v1337_v17 = vmul.f32 1.442695, %v1335_v14  ;;  %2419 = vmatprep.subr.bf16.mxu0 %v3232_v1 }
 0x615   : > { %2712 = vpow2.f32 %v1337_v17 }
 0x616   : > { %2714 = vpow2.f32 %v1068_v15  ;;  %2420 = vmatpush3.bf16.msra.mxu0 %v2651_v60 }
 0x617   : > { %v2707_v18 = vpop.eup %2706  ;;  %2716 = vpow2.f32 %v1070_v16  ;;  %2421 = vmatprep.subr.bf16.mxu0 %v3232_v1 }
 0x618   : > { %v1207_v19 = vsel %vm935_vm2, %v2707_v18, 0.0 }
 0x619   : > { %1208 = vadd.xlane.f32.xlu0 %v1207_v19 }
 0x61a   : > { %2422 = vmatpush3.bf16.msra.mxu0 %v2652_v61 }
 0x61b   : > { %v2709_v20 = vpop.eup %2708  ;;  %2423 = vmatprep.subr.bf16.mxu0 %v3232_v1 }
 0x61c   : > { %v1210_v21 = vsel %vm935_vm2, %v2709_v20, 0.0  ;;  %v2711_v22 = vpop.eup %2710 }
 0x61d   : > { %1211 = vadd.xlane.f32.xlu1 %v1210_v21  ;;  %v1344_v28 = vsel %vm935_vm2, %v2711_v22, 0.0 }
 0x61e   : > { %2424 = vmatpush3.bf16.msra.mxu0 %v2653_v62 }
 0x61f   : > { %v2713_v25 = vpop.eup %2712  ;;  %2425 = vmatprep.subr.bf16.mxu0 %v3232_v1 }
 0x620   : > { %v2715_v26 = vpop.eup %2714  ;;  %v1341_v27 = vsel %vm935_vm2, %v2713_v25, 0.0 }
 0x621   : > { %v2717_v29 = vpop.eup %2716  ;;  %1342 = vadd.xlane.f32.xlu0 %v1341_v27  ;;  %1345 = vadd.xlane.f32.xlu1 %v1344_v28  ;;  %v1072_v32 = vsel %vm935_vm2, %v2715_v26, 0.0 }
 0x622   : > { %v1075_v34 = vsel %vm935_vm2, %v2717_v29, 0.0  ;;  %2426 = vmatpush3.bf16.msra.mxu0 %v2654_v63 }
 0x623   : > { %2427 = vmatprep.subr.bf16.mxu0 %v3232_v1 }
 0x625   : > { %1073 = vadd.xlane.f32.xlu0 %v1072_v32  ;;  %1076 = vadd.xlane.f32.xlu1 %v1075_v34 }
 0x626   : > { %2428 = vmatpush3.bf16.msra.mxu0 %v2655_v5  ;;  %v2245_v5 = vld [vmem:[#allocation12] ss:$0 sm:$0xff] }
 0x627   : > { %2429 = vmatprep.subr.bf16.mxu0 %v3232_v1 }
 0x62a   : > { %2430 = vmatpush3.bf16.msra.mxu0 %v2656_v6 }
 0x62b   : > { %2431 = vmatprep.subr.bf16.mxu0 %v3232_v1 }
 0x62e   : > { %2432 = vmatpush3.bf16.msra.mxu0 %v2657_v10 }
 0x636   : > { %1218 = vrot.lane.b32.xlu1 %v3787_v55, %s3236_s18 }
 0x63a   : > { %1352 = vrot.lane.b32.xlu1 %v3787_v55, %s3235_s19 }
 0x63b   : > { %1084 = vrot.lane.b32.xlu0 %v3787_v55, %s3234_s29 }
 0x6a6   : > { %v1209_v35 = vpop.xlane.xlu0 %1208 }
 0x6aa   : > { %v1212_v36 = vpop.xlane.xlu1 %1211 }
 0x6ae   : > { %v1343_v37 = vpop.xlane.xlu0 %1342  ;;  %v1346_v38 = vpop.xlane.xlu1 %1345 }
 0x6b2   : > { %v1074_v39 = vpop.xlane.xlu0 %1073  ;;  %v1077_v40 = vpop.xlane.xlu1 %1076 }
 0x6b3   : > { %2718 = vrcp.f32 %v1074_v39  ;;  %v2660_v39 = vld [vmem:[#allocation15 + $0x4] ss:$8 sps:$4 sm:$0xff]  }
 0x6b4   : > { %2720 = vrcp.f32 %v1077_v40  ;;  %v2663_v40 = vld [vmem:[#allocation15 + $0x14] ss:$8 sps:$4 sm:$0xff]  }
 0x6b5   : > { %2722 = vrcp.f32 %v1212_v36 }
 0x6b6   : > { %v1085_v41 = vpop.permute.xlu0 %1084  ;;  %2724 = vrcp.f32 %v1209_v35  ;;  %v1219_v47 = vpop.permute.xlu1 %1218 }
 0x6b7   : > { %2388 = vmatpush3.bf16.msra.mxu1 %v1085_v41  ;;  %2726 = vrcp.f32 %v1343_v37  ;;  %v2661_v41 = vld [vmem:[#allocation15 + $0x10] ss:$8 sps:$4 sm:$0xff]  }
 0x6b8   : > { %2399 = vmatprep.subr.bf16.mxu1 %v3232_v1  ;;  %2728 = vrcp.f32 %v1346_v38  ;;  %v2658_v38 = vld [vmem:[#allocation15] ss:$8 sps:$4 sm:$0xff]  }
 0x6ba   : > { %v1353_v54 = vpop.permute.xlu1 %1352 }
 0x6bd   : > { %v2719_v42 = vpop.eup %2718 }
 0x6be   : > { %v2721_v43 = vpop.eup %2720  ;;  %v1080_v44 = vmul.f32 %v2719_v42, %v2715_v26  ;;  %v2236_v26 = vld [vmem:[#allocation11] ss:$0 sm:$0xff] }
 0x6bf   : > { %v1081_v45 = vmul.f32 %v2721_v43, %v2717_v29  ;;  %v2723_v46 = vpop.eup %2722 }
 0x6c0   : > { %v2725_v48 = vpop.eup %2724  ;;  %v1216_v49 = vmul.f32 %v2723_v46, %v2709_v20 }
 0x6c1   : > { %v1082_v55 = vpack.c.bf16 %v1081_v45, %v1080_v44  ;;  %v1215_v50 = vmul.f32 %v2725_v48, %v2707_v18  ;;  %v2727_v51 = vpop.eup %2726  ;;  %v2664_v48 = vld [vmem:[#allocation15 + $0x20] ss:$8 sps:$4 sm:$0xff]  }
 0x6c2   : > { %v2729_v53 = vpop.eup %2728  ;;  %v1349_v56 = vmul.f32 %v2727_v51, %v2713_v25  ;;  %v2672_v51 = vld [vmem:[#allocation15 + $0x44] ss:$8 sps:$4 sm:$0xff]  }
 0x6c3   : > { %2390 = vmatmul.mubr.msk.bf16.vlgmr.msra.gmra.mrb[16].mxu1 %vm935_vm2, %v1082_v55  ;;  %v1217_v52 = vpack.c.bf16 %v1216_v49, %v1215_v50  ;;  %v1350_v57 = vmul.f32 %v2729_v53, %v2711_v22  ;;  %v2669_v49 = vld [vmem:[#allocation15 + $0x34] ss:$8 sps:$4 sm:$0xff]   ;;  %v2667_v50 = vld [vmem:[#allocation15 + $0x30] ss:$8 sps:$4 sm:$0xff]  }
 0x6c4   : > { %2400 = vmatpush3.bf16.msra.mxu1 %v1219_v47  ;;  %2401 = vmatprep.mubr.msk.bf16.mxu1 %vm3233_vm0, %v3232_v1  ;;  %v2675_v53 = vld [vmem:[#allocation15 + $0x54] ss:$8 sps:$4 sm:$0xff]  }
 0x6c5   : > { %2411 = vmatprep.subr.bf16.mxu1 %v3232_v1  ;;  %v1351_v58 = vpack.c.bf16 %v1350_v57, %v1349_v56  ;;  %v2678_v56 = vld [vmem:[#allocation15 + $0x64] ss:$8 sps:$4 sm:$0xff]   ;;  %v2676_v57 = vld [vmem:[#allocation15 + $0x60] ss:$8 sps:$4 sm:$0xff]  }
 0x6cb   : > { %2402 = vmatmul.mubr.msk.bf16.vlgmr.msra.gmra.mrb[20].mxu1 %vm935_vm2, %v1217_v52  ;;  %v2670_v52 = vld [vmem:[#allocation15 + $0x40] ss:$8 sps:$4 sm:$0xff]  }
 0x6cc   : > { %2412 = vmatpush3.bf16.msra.mxu1 %v1353_v54  ;;  %2413 = vmatprep.mubr.msk.bf16.mxu1 %vm3233_vm0, %v3232_v1  ;;  %v2673_v54 = vld [vmem:[#allocation15 + $0x50] ss:$8 sps:$4 sm:$0xff]  }
 0x6cd   : > { %1677 = vmatprep.subr.bf16.mxu1 %v2660_v39 }
 0x6d3   : > { %2414 = vmatmul.mubr.msk.bf16.vlgmr.msra.gmra.mrb[24].mxu1 %vm935_vm2, %v1351_v58  ;;  %v2681_v58 = vld [vmem:[#allocation15 + $0x74] ss:$8 sps:$4 sm:$0xff]  }
 0x6d4   : > { %1709 = vmatprep.mubr.bf16.mxu1 %v3231_v0  ;;  %1678 = vmatpush1.bf16.msra.mxu1 %v2658_v38 }
 0x6d5   : > { %1679 = vmatprep.subr.bf16.mxu1 %v2663_v40 }
 0x6d8   : > { %1680 = vmatpush1.bf16.msra.mxu1 %v2661_v41 }
 0x796   : > { %v1124_v2 = vpop.f32.mrb[16].mxu1 }
 0x797   : > { %1133 = vrot.lane.b32.xlu1 %v1124_v2, %s3235_s19  ;;  %v2391_v0 = vpop.f32.mrb[17].mxu1 }
 0x798   : > { %v1127_v3 = vpop.f32.mrb[18].mxu1 }
 0x799   : > { %1135 = vrot.lane.b32.xlu0 %v1127_v3, %s3235_s19  ;;  %v2392_v4 = vpop.f32.mrb[19].mxu1 }
 0x79e   : > { %v1258_v7 = vpop.f32.mrb[20].mxu1 }
 0x79f   : > { %1267 = vrot.lane.b32.xlu1 %v1258_v7, %s3236_s18  ;;  %v2403_v8 = vpop.f32.mrb[21].mxu1 }
 0x7a0   : > { %v1261_v9 = vpop.f32.mrb[22].mxu1 }
 0x7a1   : > { %1269 = vrot.lane.b32.xlu0 %v1261_v9, %s3236_s18  ;;  %v2404_v11 = vpop.f32.mrb[23].mxu1  ;;  %v2246_v9 = vld [vmem:[#allocation14] ss:$0 sm:$0xff]  ;;  %s3124_s18 = sshll.u32 %s3237_s20, 4  ;;  %s3125_s18 = int_to_ptr.vmem [resolvable:$false] %s3124_s18 }
 0x7a2   : > { %s3126_s23 = scalar_lea.vmem %s3125_s18, 512  ;;  %p3127_p4 = scmp.lt.s32.totalorder %s3884_s17, %s3125_s18 }
 0x7a3   : > { %p3128_p1 = scmp.lt.s32.totalorder %s3126_s23, %s3120_s1 }
 0x7a5   : > { %p3129_p0 = por %p3128_p1, %p3127_p4 }
 0x7a6   : > { %v1392_v12 = vpop.f32.mrb[24].mxu1 }
 0x7a7   : > { %1401 = vrot.lane.b32.xlu1 %v1392_v12, %s3234_s29  ;;  %v2415_v13 = vpop.f32.mrb[25].mxu1  ;;  %p3130_p2 = pnand %p3129_p0, %p3123_p9 }
 0x7a8   : > { %v1395_v14 = vpop.f32.mrb[26].mxu1 }
 0x7a9   : > { %1403 = vrot.lane.b32.xlu0 %v1395_v14, %s3234_s29  ;;  %v2416_v15 = vpop.f32.mrb[27].mxu1  ;;  %v2682_v14 = vld [vmem:[#allocation18 + $0x40] sm:$0xff]   ;;  %s3882_s29 = scalar_lea.hbm %s3995_s15, %s2292_s16 }
 0x7aa   : > { %v2683_v15 = vld [vmem:[#allocation18] sm:$0xff]   ;;  %2327 = vmatprep.subr.bf16.mxu0 %v2682_v14 }
 0x809   : > { %v1134_v16 = vpop.permute.xlu1 %1133 }
 0x80a   : > { %1140 = vst.msk [vmem:[#allocation2] sm:$0xff] %vm1139_vm3, %v1134_v16  ;;  %v2684_v16 = vld [vmem:[#allocation18 + $0x48] sm:$0xff]  }
 0x80b   : > { %v1136_v17 = vpop.permute.xlu0 %1135 }
 0x80c   : > { %1141 = vst.msk [vmem:[#allocation2 + $0x8] sm:$0xff] %vm1139_vm3, %v1136_v17  ;;  %v2685_v17 = vld [vmem:[#allocation18 + $0x8] sm:$0xff]  }
 0x811   : > { %v1268_v18 = vpop.permute.xlu1 %1267 }
 0x812   : > { %1274 = vst.msk [vmem:[#allocation2] sm:$0xff] %vm1273_vm4, %v1268_v18  ;;  %v2686_v18 = vld [vmem:[#allocation18 + $0x50] sm:$0xff]  }
 0x813   : > { %v1270_v19 = vpop.permute.xlu0 %1269 }
 0x814   : > { %1275 = vst.msk [vmem:[#allocation2 + $0x8] sm:$0xff] %vm1273_vm4, %v1270_v19  ;;  %v2687_v19 = vld [vmem:[#allocation18 + $0x10] sm:$0xff]  }
 0x819   : > { %v1402_v1 = vpop.permute.xlu1 %1401 }
 0x81a   : > { %1408 = vst.msk [vmem:[#allocation2] sm:$0xff] %vm1407_vm5, %v1402_v1  ;;  %v2688_v1 = vld [vmem:[#allocation18 + $0x58] sm:$0xff]  }
 0x81b   : > { %v1404_v20 = vpop.permute.xlu0 %1403 }
 0x81c   : > { %1409 = vst.msk [vmem:[#allocation2 + $0x8] sm:$0xff] %vm1407_vm5, %v1404_v20  ;;  %v2689_v20 = vld [vmem:[#allocation18 + $0x18] sm:$0xff]  }
 0x821   : > { %v1410_v21 = vld [vmem:[#allocation2] sm:$0xff] }
 0x823   : > { %v1411_v22 = vld [vmem:[#allocation2 + $0x8] sm:$0xff] }
 0x824   : > { %v1412_v25 = vpack.c.bf16 %v1411_v22, %v1410_v21  ;;  %v2690_v21 = vld [vmem:[#allocation18 + $0x60] sm:$0xff]  }
 0x825   : > { %v2691_v22 = vld [vmem:[#allocation18 + $0x20] sm:$0xff]  }
 0x826   : > { %2434 = vmatmul.mubr.bf16.vlgmr.msra.gmra.mrb[12].mxu0 %v1412_v25  ;;  %v2692_v25 = vld [vmem:[#allocation18 + $0x68] sm:$0xff]  }
 0x827   : > { %2328 = vmatpush3.bf16.msra.mxu0 %v2683_v15 }
 0x828   : > { %2329 = vmatprep.subr.bf16.mxu0 %v2684_v16 }
 0x82b   : > { %2330 = vmatpush3.bf16.msra.mxu0 %v2685_v17 }
 0x82c   : > { %2331 = vmatprep.subr.bf16.mxu0 %v2686_v18 }
 0x82f   : > { %2332 = vmatpush3.bf16.msra.mxu0 %v2687_v19 }
 0x830   : > { %2333 = vmatprep.subr.bf16.mxu0 %v2688_v1 }
 0x833   : > { %2334 = vmatpush3.bf16.msra.mxu0 %v2689_v20 }
 0x834   : > { %2335 = vmatprep.subr.bf16.mxu0 %v2690_v21 }
 0x837   : > { %2336 = vmatpush3.bf16.msra.mxu0 %v2691_v22 }
 0x838   : > { %2337 = vmatprep.subr.bf16.mxu0 %v2692_v25 }
 0x8f9   : > { %v1518_v27 = vpop.f32.mrb[12].mxu0 }
 0x8fa   : > { %v1519_v28 = vadd.f32 %v2236_v26, %v1518_v27  ;;  %v2435_v29 = vpop.f32.mrb[13].mxu0  ;;  %v2694_v27 = vld [vmem:[#allocation18 + $0x70] sm:$0xff]  }
 0x8fb   : > { %v1521_v32 = vpop.f32.mrb[14].mxu0  ;;  %v2696_v29 = vld [vmem:[#allocation18 + $0x78] sm:$0xff]  }
 0x8fc   : > { %v1522_v34 = vadd.f32 %v2236_v26, %v1521_v32  ;;  %v2436_v35 = vpop.f32.mrb[15].mxu0  ;;  %v1525_v36 = vadd.f32 %v1519_v28, %v3754_v23  ;;  %v2693_v26 = vld [vmem:[#allocation18 + $0x28] sm:$0xff]   ;;  %v2695_v28 = vld [vmem:[#allocation18 + $0x30] sm:$0xff]   ;;  %v2697_v32 = vld [vmem:[#allocation18 + $0x38] sm:$0xff]  }
 0x8fd   : > { %2338 = vmatpush3.bf16.msra.mxu0 %v2693_v26  ;;  %v2284_v26 = vld [vmem:[#allocation21] ss:$0 sm:$0xff] }
 0x8fe   : > { %1529 = vadd.xlane.f32.xlu1 %v1525_v36  ;;  %v1526_v37 = vadd.f32 %v1522_v34, %v3757_v24  ;;  %v2666_v24 = vld [vmem:[#allocation15 + $0x24] ss:$8 sps:$4 sm:$0xff]   ;;  %2339 = vmatprep.subr.bf16.mxu0 %v2694_v27  ;;  %v1585_v34 = vld [vmem:[#allocation17] sm:$0x3] }
 0x8ff   : > { %1681 = vmatprep.subr.bf16.mxu1 %v2666_v24  ;;  %v1590_v35 = vrot.slane %v1585_v34, %v657_v31 }
 0x900   : > { %1531 = vadd.xlane.f32.xlu0 %v1526_v37  ;;  %1682 = vmatpush1.bf16.msra.mxu1 %v2664_v48 }
 0x901   : > { %1683 = vmatprep.subr.bf16.mxu1 %v2669_v49  ;;  %2340 = vmatpush3.bf16.msra.mxu0 %v2695_v28 }
 0x902   : > { %2341 = vmatprep.subr.bf16.mxu0 %v2696_v29  ;;  %v2285_v29 = vld [vmem:[#allocation23] ss:$0 sm:$0xff] }
 0x904   : > { %1684 = vmatpush1.bf16.msra.mxu1 %v2667_v50 }
 0x905   : > { %1685 = vmatprep.subr.bf16.mxu1 %v2672_v51  ;;  %2342 = vmatpush3.bf16.msra.mxu0 %v2697_v32 }
 0x908   : > { %1686 = vmatpush1.bf16.msra.mxu1 %v2670_v52 }
 0x909   : > { %1687 = vmatprep.subr.bf16.mxu1 %v2675_v53 }
 0x90c   : > { %1688 = vmatpush1.bf16.msra.mxu1 %v2673_v54 }
 0x90d   : > { %1689 = vmatprep.subr.bf16.mxu1 %v2678_v56 }
 0x910   : > { %1690 = vmatpush1.bf16.msra.mxu1 %v2676_v57 }
 0x911   : > { %1691 = vmatprep.subr.bf16.mxu1 %v2681_v58 }
 0x914   : > { %1692 = vmatpush1.bf16.msra.mxu1 %v2679_v59 }
 0x98b   : > { %v1530_v42 = vpop.xlane.xlu1 %1529 }
 0x98c   : > { %v1534_v43 = vmul.f32 0.0078125, %v1530_v42 }
 0x98d   : > { %v1532_v44 = vpop.xlane.xlu0 %1531 }
 0x98e   : > { %v1536_v45 = vsub.f32 %v1525_v36, %v1534_v43  ;;  %v1535_v55 = vmul.f32 0.0078125, %v1532_v44  ;;  %v1594_v36 = vrot.slane %v1585_v34, %v661_v33 }
 0x990   : > { %v1537_v46 = vsub.f32 %v1526_v37, %v1535_v55  ;;  %v1538_v47 = vmul.f32 %v1536_v45, %v1536_v45 }
 0x992   : > { %1540 = vadd.xlane.f32.xlu0 %v1538_v47  ;;  %v1539_v23 = vmul.f32 %v1537_v46, %v1537_v46 }
 0x996   : > { %1542 = vadd.xlane.f32.xlu0 %v1539_v23 }
 0xa1f   : > { %v1541_v60 = vpop.xlane.xlu0 %1540 }
 0xa20   : > { %v1544_v61 = vmul.f32 0.0078125, %v1541_v60 }
 0xa22   : > { %v1546_v62 = vadd.f32 1e-05, %v1544_v61 }
 0xa23   : > { %v1543_v63 = vpop.xlane.xlu0 %1542 }
 0xa24   : > { %2730 = vrsqrt.f32 %v1546_v62  ;;  %v1545_v2 = vmul.f32 0.0078125, %v1543_v63  ;;  %v2267_v63 = vld [vmem:[#allocation20] ss:$0 sm:$0xff] }
 0xa26   : > { %v1547_v0 = vadd.f32 1e-05, %v1545_v2 }
 0xa28   : > { %2732 = vrsqrt.f32 %v1547_v0 }
 0xa2e   : > { %v2731_v3 = vpop.eup %2730 }
 0xa2f   : > { %v1550_v4 = vmul.f32 %v2731_v3, %v1536_v45 }
 0xa31   : > { %v1558_v8 = vmul.f32 %v2245_v5, %v1550_v4 }
 0xa32   : > { %v2733_v6 = vpop.eup %2732 }
 0xa33   : > { %v1551_v7 = vmul.f32 %v2733_v6, %v1537_v46  ;;  %v3864_v11 = vadd.f32 %v2246_v9, %v1558_v8 }
 0xa35   : > { %v1559_v10 = vmul.f32 %v2245_v5, %v1551_v7 }
 0xa37   : > { %v3866_v12 = vadd.f32 %v2246_v9, %v1559_v10 }
 0xa39   : > { %v1568_v13 = vpack.c.bf16 %v3866_v12, %v3864_v11 }
 0xa3b   : > { %1710 = vmatmul.mubr.bf16.vlgmr.msra.gmra.mrb[28].mxu1 %v1568_v13 }
 0xb0e   : > { %v1711_v37 = vpop.f32.mrb[28].mxu1 }
 0xb0f   : > { %v1712_v38 = vadd.f32 %v1711_v37, %v1590_v35  ;;  %v1713_v39 = vpop.f32.mrb[29].mxu1 }
 0xb10   : > { %v1714_v40 = vadd.f32 %v1713_v39, %v1594_v36  ;;  %v1715_v41 = vpop.f32.mrb[30].mxu1 }
 0xb11   : > { %v2263_v42 = vmul.f32 -1.442695, %v1712_v38  ;;  %v1716_v43 = vadd.f32 %v1715_v41, %v1590_v35  ;;  %v1717_v44 = vpop.f32.mrb[31].mxu1 }
 0xb12   : > { %v2264_v45 = vmul.f32 -1.442695, %v1714_v40  ;;  %v1718_v55 = vadd.f32 %v1717_v44, %v1594_v36 }
 0xb13   : > { %2734 = vpow2.f32 %v2263_v42  ;;  %v2265_v46 = vmul.f32 -1.442695, %v1716_v43 }
 0xb14   : > { %2736 = vpow2.f32 %v2264_v45  ;;  %v2266_v47 = vmul.f32 -1.442695, %v1718_v55 }
 0xb15   : > { %2738 = vpow2.f32 %v2265_v46 }
 0xb16   : > { %2740 = vpow2.f32 %v2266_v47 }
 0xb1d   : > { %v2735_v31 = vpop.eup %2734 }
 0xb1e   : > { %v2737_v23 = vpop.eup %2736  ;;  %v1732_v30 = vadd.f32 1.0, %v2735_v31 }
 0xb1f   : > { %v2739_v33 = vpop.eup %2738  ;;  %v1733_v24 = vadd.f32 1.0, %v2737_v23 }
 0xb20   : > { %v2741_v48 = vpop.eup %2740  ;;  %2742 = vrcp.f32 %v1732_v30  ;;  %v1734_v49 = vadd.f32 1.0, %v2739_v33 }
 0xb21   : > { %2744 = vrcp.f32 %v1733_v24  ;;  %v1735_v50 = vadd.f32 1.0, %v2741_v48 }
 0xb22   : > { %2746 = vrcp.f32 %v1734_v49 }
 0xb23   : > { %2748 = vrcp.f32 %v1735_v50 }
 0xb2a   : > { %v2743_v51 = vpop.eup %2742 }
 0xb2b   : > { %v2745_v52 = vpop.eup %2744  ;;  %v1744_v56 = vmul.f32 %v2743_v51, %v1712_v38 }
 0xb2c   : > { %v2747_v53 = vpop.eup %2746  ;;  %v1745_v58 = vmul.f32 %v2745_v52, %v1714_v40 }
 0xb2d   : > { %v2749_v54 = vpop.eup %2748  ;;  %v1746_v57 = vmul.f32 %v2747_v53, %v1716_v43 }
 0xb2e   : > { %v1747_v59 = vmul.f32 %v2749_v54, %v1718_v55 }
 0xb2f   : > { %v1748_v60 = vpack.c.bf16 %v1746_v57, %v1744_v56 }
 0xb30   : > { %v1749_v61 = vpack.c.bf16 %v1747_v59, %v1745_v58 }
 0xb32   : > { %1917 = vmatprep.mubr.bf16.mxu0 %v1749_v61 }
 0xb33   : > { %1918 = vmatmul.mubr.bf16.vlgmr.msra.gmra.mrb[16].mxu0 %v1748_v60 }
 0xc06   : > { %v2343_v62 = vpop.f32.mrb[16].mxu0 }
 0xc07   : > { %v2344_v2 = vpop.f32.mrb[17].mxu0 }
 0xc08   : > { %v2345_v0 = vadd.f32 %v2344_v2, %v2343_v62  ;;  %v2346_v3 = vpop.f32.mrb[18].mxu0 }
 0xc09   : > { %v2347_v4 = vpop.f32.mrb[19].mxu0 }
 0xc0a   : > { %v1920_v5 = vadd.f32 %v2345_v0, %v2267_v63  ;;  %v2348_v6 = vadd.f32 %v2347_v4, %v2346_v3 }
 0xc0c   : > { %v1923_v7 = vadd.f32 %v2348_v6, %v2267_v63  ;;  %v1926_v8 = vadd.f32 %v1920_v5, %v3864_v11 }
 0xc0e   : > { %1930 = vadd.xlane.f32.xlu1 %v1926_v8  ;;  %v1927_v9 = vadd.f32 %v1923_v7, %v3866_v12 }
 0xc10   : > { %1932 = vadd.xlane.f32.xlu0 %v1927_v9 }
 0xc9b   : > { %v1931_v10 = vpop.xlane.xlu1 %1930 }
 0xc9c   : > { %v1934_v13 = vmul.f32 0.0078125, %v1931_v10 }
 0xc9d   : > { %v1933_v14 = vpop.xlane.xlu0 %1932 }
 0xc9e   : > { %v1936_v15 = vsub.f32 %v1926_v8, %v1934_v13  ;;  %v1935_v16 = vmul.f32 0.0078125, %v1933_v14 }
 0xca0   : > { %v1937_v17 = vsub.f32 %v1927_v9, %v1935_v16  ;;  %v1938_v18 = vmul.f32 %v1936_v15, %v1936_v15 }
 0xca2   : > { %1940 = vadd.xlane.f32.xlu1 %v1938_v18  ;;  %v1939_v19 = vmul.f32 %v1937_v17, %v1937_v17 }
 0xca4   : > { %1942 = vadd.xlane.f32.xlu0 %v1939_v19 }
 0xd2f   : > { %v1941_v1 = vpop.xlane.xlu1 %1940 }
 0xd30   : > { %v1944_v20 = vmul.f32 0.0078125, %v1941_v1 }
 0xd31   : > { %v1943_v21 = vpop.xlane.xlu0 %1942 }
 0xd32   : > { %v1946_v11 = vadd.f32 1e-05, %v1944_v20  ;;  %v1945_v22 = vmul.f32 0.0078125, %v1943_v21 }
 0xd34   : > { %2750 = vrsqrt.f32 %v1946_v11  ;;  %v1947_v12 = vadd.f32 1e-05, %v1945_v22 }
 0xd36   : > { %2752 = vrsqrt.f32 %v1947_v12 }
 0xd3e   : > { %v2751_v25 = vpop.eup %2750 }
 0xd3f   : > { %v1950_v27 = vmul.f32 %v2751_v25, %v1936_v15 }
 0xd40   : > { %v2753_v28 = vpop.eup %2752 }
 0xd41   : > { %v1958_v32 = vmul.f32 %v2284_v26, %v1950_v27  ;;  %v1951_v34 = vmul.f32 %v2753_v28, %v1937_v17 }
 0xd43   : > { %v1966_v35 = vadd.f32 %v2285_v29, %v1958_v32  ;;  %v1959_v36 = vmul.f32 %v2284_v26, %v1951_v34 }
 0xd45   : > { %v1967_v37 = vadd.f32 %v2285_v29, %v1959_v36  ;;  %1968 = vst [vmem:[%s616_s30] sm:$0xff] %v1966_v35 }
 0xd47   : > { %1969 = vst [vmem:[%s616_s30 + $0x8] sm:$0xff] %v1967_v37 }
 0xd48   : > { %3133 = shalt.err (!%p3130_p2)
}
 0xd49   : > { %s3134_s16 = scalar_lea.hbm %s3882_s29, 256  ;;  %s3138_s20 = scalar_lea.hbm %s3995_s15, 512 }
 0xd4a   : > { %p3135_p6 = scmp.ne.s32.totalorder %s3882_s29, %s3134_s16  ;;  %p3139_p11 = scmp.lt.u32.totalorder %s3882_s29, %s3995_s15 }
 0xd4b   : > { %p3140_p3 = scmp.lt.u32.totalorder %s3138_s20, %s3134_s16  ;;  %p3142_p13 = scmp.lt.u32.totalorder %s3134_s16, %s3882_s29 }
 0xd4c   : > { %p3136_p5 = pnand %p3135_p6, %p3996_p8 }
 0xd4d   : > { %p3141_p12 = por %p3140_p3, %p3139_p11 }
 0xd4e   : > { %p3137_p10 = pneg %p3136_p5 }
 0xd4f   : > { %p3143_p7 = por %p3142_p13, %p3141_p12 }
 0xd51   : > { %p3144_p9 = pnand %p3143_p7, %p3137_p10 }
 0xd53   : > { %3147 = shalt.err (!%p3144_p9)
}
 0xd54   : > { %s3238_s1 = smov 128   ;;  %s3239_s23 = smov 8  }
 0xd55   : > { %s3997_s2 = scalar_lea.sflag [#allocation5], %s3712_s25 }
 0xd56   : > { %2487 = dma.vmem_to_hbm [thread:$0]  (%p3996_p8), %s3884_s17, 256, %s3882_s29, %s3997_s2, %s3238_s1, %s3238_s1, %s3239_s23  }
 0xd57 PF: > { %s3998_s30 = sld [smem:[#allocation33_spill]]  ;;  %p3999_p4 = scmp.ne.s32.totalorder %s3975_s22, 0 }
 0xd58   : > { %p4000_p1 = scmp.ge.s32.totalorder %s3210_s28, 2 }
 0xd5a   : > { %p2531_p0 = pnand %p4000_p1, %p3999_p4 }
 0xd5d   : > { %s1999_s19 = sand.u32 1, %s3998_s30  }
 0xd5e   : > { %s2000_s16 = scalar_lea.sflag [#allocation5], %s1999_s19 }
 0xd5f   : > { %3193 = dma.done.wait (!%p2531_p0), %s2000_s16, 256  }
 0xd60   : > { %3195 = vsyncadd (!%p2531_p0), %s2000_s16, 4294967040  ;;  %p32_p2 = scmp.ge.s32.totalorder %s3630_s0, 4   ;;  %s4001_s25 = smov %s3202_s26 }
 0xd61   : > { %s4002_s26 = smov %s3206_s27  ;;  %s4003_s27 = smov %s3641_s14 }
 0xd62   : > { %s4004_s28 = smov %s3630_s0  ;;  %34 = sbr.rel (!%p32_p2) target bundleno = 16 (0x10), region = 165 }
 0xd69   :  { %2005 = vsyncpa [#allocation4], 1 }
 0xd6a   :  { %2007 = vsyncpa [#allocation4 + $0x1], 1 }
 0xd6b   :  { %2008 = vsyncpa [#allocation7], 1 }
 0xd6c   :  { %2009 = vsyncpa [#allocation10], 1 }
 0xd6d   :  { %2010 = vsyncpa [#allocation13], 1 }
 0xd6e   :  { %2011 = vsyncpa [#allocation16], 1 }
 0xd6f   :  { %2012 = vsyncpa [#allocation19], 1 }
 0xd70   :  { %2013 = vsyncpa [#allocation22], 1 }
 0xd71   :  { %2014 = vsyncpa [#allocation5], 1 }
 0xd72   :  { %2016 = vsyncpa [#allocation5 + $0x1], 1 }

</bundles_post_ra>
